<compile_context>
chip_gen: v5e
topology: v5e:2x2
jax: 0.10.0
libtpu: 0.0.40
codegen_flags: <defaults>
</compile_context>

<pallas_src>
import jax
import jax.numpy as jnp
from jax.experimental import pallas as pl
from jax.experimental.pallas import tpu as pltpu

D_MODEL = 32
N_HEADS = 4
D_FF = 64
E_HEAD = D_MODEL // N_HEADS
N_LAYERS = 2
EPS = 1e-5  # PyTorch LayerNorm default

# Row layout of the packed (rows, D_MODEL) "small vector" operand:
# per layer: [bq*scale, bk, bv, bo, b2, g1, be1, g2, be2], then [gn, bn].
_VEC_PER_LAYER = 9
_VEC_ROWS = N_LAYERS * _VEC_PER_LAYER + 2


def _layernorm(x, gamma, beta):
    mu = jnp.mean(x, axis=-1, keepdims=True)
    var = jnp.mean((x - mu) ** 2, axis=-1, keepdims=True)
    return (x - mu) * jax.lax.rsqrt(var + EPS) * gamma + beta


def encoder_fused_kernel(x_ref, wa_ref, w1_ref, w2_ref, b1_ref, vec_ref, o_ref):
    """One grid step = one batch element. Both layers + final norm fused."""
    L = x_ref.shape[1]
    xf = x_ref[0].astype(jnp.float32)            # (L, D) residual stream, kept 2-D

    def vrow(r):                                 # (1, D) broadcast row from packed table
        return vec_ref[r:r + 1, :]

    for l in range(N_LAYERS):                    # static unroll (2 layers)
        base = l * _VEC_PER_LAYER
        bq, bk, bv, bo, b2 = [vrow(base + i) for i in range(5)]
        g1, be1, g2, be2 = [vrow(base + 5 + i) for i in range(4)]

        # ---- flat K=32 projections on the 2-D slab (scale pre-folded into wq/bq) ----
        q = jnp.dot(xf, wa_ref[4 * l + 0], preferred_element_type=jnp.float32) + bq
        k = jnp.dot(xf, wa_ref[4 * l + 1], preferred_element_type=jnp.float32) + bk
        v = jnp.dot(xf, wa_ref[4 * l + 2], preferred_element_type=jnp.float32) + bv

        # ---- per-head attention: go 3-D only for the score/context contractions ----
        qh = jnp.transpose(q.reshape(L, N_HEADS, E_HEAD), (1, 0, 2))    # (H, L, E)
        kh = jnp.transpose(k.reshape(L, N_HEADS, E_HEAD), (1, 0, 2))
        vh = jnp.transpose(v.reshape(L, N_HEADS, E_HEAD), (1, 0, 2))
        s = jnp.einsum('hle,hme->hlm', qh, kh, preferred_element_type=jnp.float32)
        s = s - jnp.max(s, axis=-1, keepdims=True)
        p = jnp.exp(s)
        p = p / jnp.sum(p, axis=-1, keepdims=True)        # exact divide (tight numerics)
        ctx = jnp.einsum('hlm,hme->hle', p, vh, preferred_element_type=jnp.float32)
        ctx = jnp.transpose(ctx, (1, 0, 2)).reshape(L, D_MODEL)          # back to (L, D)

        # ---- single K=32 output projection (no per-head loop / head-sum) ----
        attn_f = jnp.dot(ctx, wa_ref[4 * l + 3], preferred_element_type=jnp.float32) + bo

        # ---- EncoderLayer: residual + norm1, FFN (1x1 conv -> relu -> 1x1 conv), residual + norm2 ----
        x1 = _layernorm(xf + attn_f, g1, be1)
        y = jnp.dot(x1, w1_ref[l], preferred_element_type=jnp.float32) + b1_ref[l]
        y = jnp.maximum(y, 0.0)                                          # relu
        y = jnp.dot(y, w2_ref[l], preferred_element_type=jnp.float32) + b2
        xf = _layernorm(x1 + y, g2, be2)

    # final Encoder norm_layer
    gn = vrow(N_LAYERS * _VEC_PER_LAYER)
    bn = vrow(N_LAYERS * _VEC_PER_LAYER + 1)
    o_ref[0] = _layernorm(xf, gn, bn).astype(o_ref.dtype)


def _prepare_params(layer_params_list, norm_gamma, norm_beta):
    """Pack all parameters into 5 batch-invariant operands; fold the attention
    scale into wq/bq.  Pure JAX, constant-folded by XLA."""
    scale = 1.0 / jnp.sqrt(jnp.float32(E_HEAD))
    wa, w1s, w2s, b1s, vec_rows = [], [], [], [], []
    for p in layer_params_list:
        wa += [p["wq"] * scale, p["wk"], p["wv"], p["wo"]]
        w1s.append(p["w1"])
        w2s.append(p["w2"])
        b1s.append(p["b1"].reshape(1, D_FF))
        vec_rows += [p["bq"] * scale, p["bk"], p["bv"], p["bo"], p["b2"],
                     p["g1"], p["be1"], p["g2"], p["be2"]]
    vec_rows += [norm_gamma, norm_beta]
    return (jnp.stack(wa),          # (N_LAYERS*4, D, D)
            jnp.stack(w1s),         # (N_LAYERS, D, D_FF)
            jnp.stack(w2s),         # (N_LAYERS, D_FF, D)
            jnp.stack(b1s),         # (N_LAYERS, 1, D_FF)
            jnp.stack(vec_rows))    # (_VEC_ROWS, D)


@jax.jit
def encoder_forward(x, layer_params_list, norm_gamma, norm_beta):
    B, L, D = x.shape
    assert D == D_MODEL and len(layer_params_list) == N_LAYERS
    wa, w1s, w2s, b1s, vecs = _prepare_params(layer_params_list, norm_gamma, norm_beta)

    out = pl.pallas_call(
        encoder_fused_kernel,
        out_shape=jax.ShapeDtypeStruct((B, L, D), x.dtype),
        grid=(B,),
        in_specs=[
            pl.BlockSpec((1, L, D), lambda b: (b, 0, 0)),    # activations tiled over batch
            pl.BlockSpec(wa.shape, lambda b: (0, 0, 0)),     # weights: constant block, VMEM-resident
            pl.BlockSpec(w1s.shape, lambda b: (0, 0, 0)),
            pl.BlockSpec(w2s.shape, lambda b: (0, 0, 0)),
            pl.BlockSpec(b1s.shape, lambda b: (0, 0, 0)),
            pl.BlockSpec(vecs.shape, lambda b: (0, 0)),
        ],
        out_specs=pl.BlockSpec((1, L, D), lambda b: (b, 0, 0)),
        compiler_params=pltpu.CompilerParams(
            dimension_semantics=("parallel",),   # shards batch across both TCs on v7x
            vmem_limit_bytes=32 * 1024 * 1024),  # explicit budget (usage is ~0.2 MiB)
    )(x, wa, w1s, w2s, b1s, vecs)
    return out


def encoder_reference(x, layer_params_list, norm_gamma, norm_beta):
    """Pure-JAX mirror of the PyTorch Encoder forward (for self-check)."""
    B, L, D = x.shape
    scale = 1.0 / jnp.sqrt(jnp.float32(E_HEAD))
    for p in layer_params_list:
        q = (x @ p["wq"] + p["bq"]).reshape(B, L, N_HEADS, E_HEAD)
        k = (x @ p["wk"] + p["bk"]).reshape(B, L, N_HEADS, E_HEAD)
        v = (x @ p["wv"] + p["bv"]).reshape(B, L, N_HEADS, E_HEAD)
        s = jnp.einsum('blhe,bshe->bhls', q, k) * scale
        a = jax.nn.softmax(s, axis=-1)
        ctx = jnp.einsum('bhls,bshe->blhe', a, v).reshape(B, L, D)
        new_x = ctx @ p["wo"] + p["bo"]
        x1 = _layernorm(x + new_x, p["g1"], p["be1"])
        y = jnp.maximum(x1 @ p["w1"] + p["b1"], 0.0)
        y = y @ p["w2"] + p["b2"]
        x = _layernorm(x1 + y, p["g2"], p["be2"])
    return _layernorm(x, norm_gamma, norm_beta)


def init_layer_params(key):
    ks = jax.random.split(key, 8)
    s = 0.1
    return {
        "wq": s * jax.random.normal(ks[0], (D_MODEL, D_MODEL), jnp.float32),
        "bq": jnp.zeros((D_MODEL,), jnp.float32),
        "wk": s * jax.random.normal(ks[1], (D_MODEL, D_MODEL), jnp.float32),
        "bk": jnp.zeros((D_MODEL,), jnp.float32),
        "wv": s * jax.random.normal(ks[2], (D_MODEL, D_MODEL), jnp.float32),
        "bv": jnp.zeros((D_MODEL,), jnp.float32),
        "wo": s * jax.random.normal(ks[3], (D_MODEL, D_MODEL), jnp.float32),
        "bo": jnp.zeros((D_MODEL,), jnp.float32),
        # Conv1d(d_model, d_ff, kernel_size=1) == pointwise linear (stored as (in, out))
        "w1": s * jax.random.normal(ks[4], (D_MODEL, D_FF), jnp.float32),
        "b1": jnp.zeros((D_FF,), jnp.float32),
        "w2": s * jax.random.normal(ks[5], (D_FF, D_MODEL), jnp.float32),
        "b2": jnp.zeros((D_MODEL,), jnp.float32),
        "g1": jnp.ones((D_MODEL,), jnp.float32),
        "be1": jnp.zeros((D_MODEL,), jnp.float32),
        "g2": jnp.ones((D_MODEL,), jnp.float32),
        "be2": jnp.zeros((D_MODEL,), jnp.float32),
    }


if __name__ == "__main__":
    B, L = 2, 8
    key = jax.random.PRNGKey(0)
    kx, k1, k2 = jax.random.split(key, 3)
    x = jax.random.normal(kx, (B, L, D_MODEL), jnp.float32)

    layer_params = (init_layer_params(k1), init_layer_params(k2))
    norm_gamma = jnp.ones((D_MODEL,), jnp.float32)
    norm_beta = jnp.zeros((D_MODEL,), jnp.float32)

    out = encoder_forward(x, layer_params, norm_gamma, norm_beta)
    jax.block_until_ready(out)

    # attns: FullAttention(output_attention=False) returns None per layer.
    attns = [None for _ in layer_params]

    ref = encoder_reference(x, layer_params, norm_gamma, norm_beta)
    assert out.shape == (B, L, D_MODEL)
    assert jnp.all(jnp.isfinite(out))
    err = float(jnp.max(jnp.abs(out - ref)))
    assert jnp.allclose(out, ref, atol=1e-4, rtol=1e-4), err
    print("KERNEL_OK")
</pallas_src>

<mosaic_0001>
module attributes {stable_mosaic.version = 11 : i64} {
  func.func @encoder_fused_kernel(%arg0: i32, %arg1: memref<1x8x32xf32, #tpu.memory_space<vmem>>, %arg2: memref<8x32x32xf32, #tpu.memory_space<vmem>>, %arg3: memref<2x32x64xf32, #tpu.memory_space<vmem>>, %arg4: memref<2x64x32xf32, #tpu.memory_space<vmem>>, %arg5: memref<2x1x64xf32, #tpu.memory_space<vmem>>, %arg6: memref<20x32xf32, #tpu.memory_space<vmem>>, %arg7: memref<1x8x32xf32, #tpu.memory_space<vmem>>) attributes {dimension_semantics = [#tpu.dimension_semantics<parallel>], iteration_bounds = array<i64: 2>, scalar_prefetch = 0 : i64, scratch_operands = 0 : i64, tpu.core_type = #tpu.core_type<tc>, window_params = [{transform_indices = @transform_0, window_bounds = array<i64: 1, 8, 32>}, {pipeline_mode = #tpu.pipeline_mode<synchronous>, transform_indices = @transform_1, window_bounds = array<i64: 8, 32, 32>}, {pipeline_mode = #tpu.pipeline_mode<synchronous>, transform_indices = @transform_2, window_bounds = array<i64: 2, 32, 64>}, {pipeline_mode = #tpu.pipeline_mode<synchronous>, transform_indices = @transform_3, window_bounds = array<i64: 2, 64, 32>}, {pipeline_mode = #tpu.pipeline_mode<synchronous>, transform_indices = @transform_4, window_bounds = array<i64: 2, 1, 64>}, {pipeline_mode = #tpu.pipeline_mode<synchronous>, transform_indices = @transform_5, window_bounds = array<i64: 20, 32>}, {transform_indices = @transform_6, window_bounds = array<i64: 1, 8, 32>}]} {
    %c0 = arith.constant 0 : index
    %c0_0 = arith.constant 0 : index
    %c0_1 = arith.constant 0 : index
    %0 = vector.load %arg1[%c0, %c0_0, %c0_1] : memref<1x8x32xf32, #tpu.memory_space<vmem>>, vector<1x8x32xf32>
    %1 = vector.shape_cast %0 : vector<1x8x32xf32> to vector<8x32xf32>
    %c0_2 = arith.constant 0 : index
    %c0_3 = arith.constant 0 : index
    %2 = vector.load %arg6[%c0_2, %c0_3] : memref<20x32xf32, #tpu.memory_space<vmem>>, vector<1x32xf32>
    %c1 = arith.constant 1 : index
    %c0_4 = arith.constant 0 : index
    %3 = vector.load %arg6[%c1, %c0_4] : memref<20x32xf32, #tpu.memory_space<vmem>>, vector<1x32xf32>
    %c2 = arith.constant 2 : index
    %c0_5 = arith.constant 0 : index
    %4 = vector.load %arg6[%c2, %c0_5] : memref<20x32xf32, #tpu.memory_space<vmem>>, vector<1x32xf32>
    %c3 = arith.constant 3 : index
    %c0_6 = arith.constant 0 : index
    %5 = vector.load %arg6[%c3, %c0_6] : memref<20x32xf32, #tpu.memory_space<vmem>>, vector<1x32xf32>
    %c4 = arith.constant 4 : index
    %c0_7 = arith.constant 0 : index
    %6 = vector.load %arg6[%c4, %c0_7] : memref<20x32xf32, #tpu.memory_space<vmem>>, vector<1x32xf32>
    %c5 = arith.constant 5 : index
    %c0_8 = arith.constant 0 : index
    %7 = vector.load %arg6[%c5, %c0_8] : memref<20x32xf32, #tpu.memory_space<vmem>>, vector<1x32xf32>
    %c6 = arith.constant 6 : index
    %c0_9 = arith.constant 0 : index
    %8 = vector.load %arg6[%c6, %c0_9] : memref<20x32xf32, #tpu.memory_space<vmem>>, vector<1x32xf32>
    %c7 = arith.constant 7 : index
    %c0_10 = arith.constant 0 : index
    %9 = vector.load %arg6[%c7, %c0_10] : memref<20x32xf32, #tpu.memory_space<vmem>>, vector<1x32xf32>
    %c8 = arith.constant 8 : index
    %c0_11 = arith.constant 0 : index
    %10 = vector.load %arg6[%c8, %c0_11] : memref<20x32xf32, #tpu.memory_space<vmem>>, vector<1x32xf32>
    %c0_12 = arith.constant 0 : index
    %c0_13 = arith.constant 0 : index
    %c0_14 = arith.constant 0 : index
    %11 = vector.load %arg2[%c0_12, %c0_13, %c0_14] : memref<8x32x32xf32, #tpu.memory_space<vmem>>, vector<1x32x32xf32>
    %12 = vector.shape_cast %11 : vector<1x32x32xf32> to vector<32x32xf32>
    %cst = arith.constant dense<0.000000e+00> : vector<8x32xf32>
    %13 = tpu.matmul %1, %12, %cst {dimension_numbers = #tpu.dot_dimension_numbers<[1], [0], [0], [1], [0, 0, 1, 1], [], []>} : vector<8x32xf32>, vector<32x32xf32>, vector<8x32xf32> -> vector<8x32xf32>
    %14 = vector.broadcast %2 : vector<1x32xf32> to vector<8x32xf32>
    %15 = arith.addf %13, %14 : vector<8x32xf32>
    %c1_15 = arith.constant 1 : index
    %c0_16 = arith.constant 0 : index
    %c0_17 = arith.constant 0 : index
    %16 = vector.load %arg2[%c1_15, %c0_16, %c0_17] : memref<8x32x32xf32, #tpu.memory_space<vmem>>, vector<1x32x32xf32>
    %17 = vector.shape_cast %16 : vector<1x32x32xf32> to vector<32x32xf32>
    %cst_18 = arith.constant dense<0.000000e+00> : vector<8x32xf32>
    %18 = tpu.matmul %1, %17, %cst_18 {dimension_numbers = #tpu.dot_dimension_numbers<[1], [0], [0], [1], [0, 0, 1, 1], [], []>} : vector<8x32xf32>, vector<32x32xf32>, vector<8x32xf32> -> vector<8x32xf32>
    %19 = vector.broadcast %3 : vector<1x32xf32> to vector<8x32xf32>
    %20 = arith.addf %18, %19 : vector<8x32xf32>
    %c2_19 = arith.constant 2 : index
    %c0_20 = arith.constant 0 : index
    %c0_21 = arith.constant 0 : index
    %21 = vector.load %arg2[%c2_19, %c0_20, %c0_21] : memref<8x32x32xf32, #tpu.memory_space<vmem>>, vector<1x32x32xf32>
    %22 = vector.shape_cast %21 : vector<1x32x32xf32> to vector<32x32xf32>
    %cst_22 = arith.constant dense<0.000000e+00> : vector<8x32xf32>
    %23 = tpu.matmul %1, %22, %cst_22 {dimension_numbers = #tpu.dot_dimension_numbers<[1], [0], [0], [1], [0, 0, 1, 1], [], []>} : vector<8x32xf32>, vector<32x32xf32>, vector<8x32xf32> -> vector<8x32xf32>
    %24 = vector.broadcast %4 : vector<1x32xf32> to vector<8x32xf32>
    %25 = arith.addf %23, %24 : vector<8x32xf32>
    %26 = vector.shape_cast %15 : vector<8x32xf32> to vector<8x4x8xf32>
    %27 = tpu.transpose %26, [1, 0, 2] : vector<8x4x8xf32> -> vector<4x8x8xf32>
    %28 = vector.shape_cast %20 : vector<8x32xf32> to vector<8x4x8xf32>
    %29 = tpu.transpose %28, [1, 0, 2] : vector<8x4x8xf32> -> vector<4x8x8xf32>
    %30 = vector.shape_cast %25 : vector<8x32xf32> to vector<8x4x8xf32>
    %31 = tpu.transpose %30, [1, 0, 2] : vector<8x4x8xf32> -> vector<4x8x8xf32>
    "tpu.trace_start"() <{level = 10 : i32, message = "hle,hme->hlm"}> : () -> ()
    %cst_23 = arith.constant dense<0.000000e+00> : vector<4x8x8xf32>
    %32 = tpu.matmul %27, %29, %cst_23 {dimension_numbers = #tpu.dot_dimension_numbers<[2], [2], [1], [1], [0, 0, 0, 1, 1, 1], [0], [0]>} : vector<4x8x8xf32>, vector<4x8x8xf32>, vector<4x8x8xf32> -> vector<4x8x8xf32>
    "tpu.trace_stop"() : () -> ()
    %cst_24 = arith.constant dense<0xFF800000> : vector<4x8xf32>
    %33 = vector.multi_reduction <maximumf>, %32, %cst_24 [2] : vector<4x8x8xf32> to vector<4x8xf32>
    %34 = vector.shape_cast %33 : vector<4x8xf32> to vector<4x8x1xf32>
    %35 = vector.broadcast %34 : vector<4x8x1xf32> to vector<4x8x8xf32>
    %36 = arith.subf %32, %35 : vector<4x8x8xf32>
    %37 = math.exp %36 : vector<4x8x8xf32>
    %cst_25 = arith.constant dense<0.000000e+00> : vector<4x8xf32>
    %38 = vector.multi_reduction <add>, %37, %cst_25 [2] : vector<4x8x8xf32> to vector<4x8xf32>
    %39 = vector.shape_cast %38 : vector<4x8xf32> to vector<4x8x1xf32>
    %40 = vector.broadcast %39 : vector<4x8x1xf32> to vector<4x8x8xf32>
    %41 = arith.divf %37, %40 : vector<4x8x8xf32>
    "tpu.trace_start"() <{level = 10 : i32, message = "hlm,hme->hle"}> : () -> ()
    %cst_26 = arith.constant dense<0.000000e+00> : vector<4x8x8xf32>
    %42 = tpu.matmul %41, %31, %cst_26 {dimension_numbers = #tpu.dot_dimension_numbers<[2], [1], [1], [2], [0, 0, 0, 1, 1, 2], [0], [0]>} : vector<4x8x8xf32>, vector<4x8x8xf32>, vector<4x8x8xf32> -> vector<4x8x8xf32>
    "tpu.trace_stop"() : () -> ()
    %43 = tpu.transpose %42, [1, 0, 2] : vector<4x8x8xf32> -> vector<8x4x8xf32>
    %44 = vector.shape_cast %43 : vector<8x4x8xf32> to vector<8x32xf32>
    %c3_27 = arith.constant 3 : index
    %c0_28 = arith.constant 0 : index
    %c0_29 = arith.constant 0 : index
    %45 = vector.load %arg2[%c3_27, %c0_28, %c0_29] : memref<8x32x32xf32, #tpu.memory_space<vmem>>, vector<1x32x32xf32>
    %46 = vector.shape_cast %45 : vector<1x32x32xf32> to vector<32x32xf32>
    %cst_30 = arith.constant dense<0.000000e+00> : vector<8x32xf32>
    %47 = tpu.matmul %44, %46, %cst_30 {dimension_numbers = #tpu.dot_dimension_numbers<[1], [0], [0], [1], [0, 0, 1, 1], [], []>} : vector<8x32xf32>, vector<32x32xf32>, vector<8x32xf32> -> vector<8x32xf32>
    %48 = vector.broadcast %5 : vector<1x32xf32> to vector<8x32xf32>
    %49 = arith.addf %47, %48 : vector<8x32xf32>
    %50 = arith.addf %1, %49 : vector<8x32xf32>
    %cst_31 = arith.constant dense<0.000000e+00> : vector<8xf32>
    %51 = vector.multi_reduction <add>, %50, %cst_31 [1] : vector<8x32xf32> to vector<8xf32>
    %52 = vector.shape_cast %51 : vector<8xf32> to vector<8x1xf32>
    %cst_32 = arith.constant 3.200000e+01 : f32
    %53 = vector.broadcast %cst_32 : f32 to vector<8x1xf32>
    %54 = arith.divf %52, %53 : vector<8x1xf32>
    %55 = vector.broadcast %54 : vector<8x1xf32> to vector<8x32xf32>
    %56 = arith.subf %50, %55 : vector<8x32xf32>
    %57 = arith.mulf %56, %56 : vector<8x32xf32>
    %cst_33 = arith.constant dense<0.000000e+00> : vector<8xf32>
    %58 = vector.multi_reduction <add>, %57, %cst_33 [1] : vector<8x32xf32> to vector<8xf32>
    %59 = vector.shape_cast %58 : vector<8xf32> to vector<8x1xf32>
    %cst_34 = arith.constant 3.200000e+01 : f32
    %60 = vector.broadcast %cst_34 : f32 to vector<8x1xf32>
    %61 = arith.divf %59, %60 : vector<8x1xf32>
    %62 = vector.broadcast %54 : vector<8x1xf32> to vector<8x32xf32>
    %63 = arith.subf %50, %62 : vector<8x32xf32>
    %cst_35 = arith.constant 9.99999974E-6 : f32
    %64 = vector.broadcast %cst_35 : f32 to vector<8x1xf32>
    %65 = arith.addf %61, %64 : vector<8x1xf32>
    %66 = math.rsqrt %65 : vector<8x1xf32>
    %67 = vector.broadcast %66 : vector<8x1xf32> to vector<8x32xf32>
    %68 = arith.mulf %63, %67 : vector<8x32xf32>
    %69 = vector.broadcast %7 : vector<1x32xf32> to vector<8x32xf32>
    %70 = arith.mulf %68, %69 : vector<8x32xf32>
    %71 = vector.broadcast %8 : vector<1x32xf32> to vector<8x32xf32>
    %72 = arith.addf %70, %71 : vector<8x32xf32>
    %c0_36 = arith.constant 0 : index
    %c0_37 = arith.constant 0 : index
    %c0_38 = arith.constant 0 : index
    %73 = vector.load %arg3[%c0_36, %c0_37, %c0_38] : memref<2x32x64xf32, #tpu.memory_space<vmem>>, vector<1x32x64xf32>
    %74 = vector.shape_cast %73 : vector<1x32x64xf32> to vector<32x64xf32>
    %cst_39 = arith.constant dense<0.000000e+00> : vector<8x64xf32>
    %75 = tpu.matmul %72, %74, %cst_39 {dimension_numbers = #tpu.dot_dimension_numbers<[1], [0], [0], [1], [0, 0, 1, 1], [], []>} : vector<8x32xf32>, vector<32x64xf32>, vector<8x64xf32> -> vector<8x64xf32>
    %c0_40 = arith.constant 0 : index
    %c0_41 = arith.constant 0 : index
    %c0_42 = arith.constant 0 : index
    %76 = vector.load %arg5[%c0_40, %c0_41, %c0_42] : memref<2x1x64xf32, #tpu.memory_space<vmem>>, vector<1x1x64xf32>
    %77 = vector.shape_cast %76 : vector<1x1x64xf32> to vector<1x64xf32>
    %78 = vector.broadcast %77 : vector<1x64xf32> to vector<8x64xf32>
    %79 = arith.addf %75, %78 : vector<8x64xf32>
    %cst_43 = arith.constant 0.000000e+00 : f32
    %80 = vector.broadcast %cst_43 : f32 to vector<8x64xf32>
    %81 = arith.maximumf %79, %80 : vector<8x64xf32>
    %c0_44 = arith.constant 0 : index
    %c0_45 = arith.constant 0 : index
    %c0_46 = arith.constant 0 : index
    %82 = vector.load %arg4[%c0_44, %c0_45, %c0_46] : memref<2x64x32xf32, #tpu.memory_space<vmem>>, vector<1x64x32xf32>
    %83 = vector.shape_cast %82 : vector<1x64x32xf32> to vector<64x32xf32>
    %cst_47 = arith.constant dense<0.000000e+00> : vector<8x32xf32>
    %84 = tpu.matmul %81, %83, %cst_47 {dimension_numbers = #tpu.dot_dimension_numbers<[1], [0], [0], [1], [0, 0, 1, 1], [], []>} : vector<8x64xf32>, vector<64x32xf32>, vector<8x32xf32> -> vector<8x32xf32>
    %85 = vector.broadcast %6 : vector<1x32xf32> to vector<8x32xf32>
    %86 = arith.addf %84, %85 : vector<8x32xf32>
    %87 = arith.addf %72, %86 : vector<8x32xf32>
    %cst_48 = arith.constant dense<0.000000e+00> : vector<8xf32>
    %88 = vector.multi_reduction <add>, %87, %cst_48 [1] : vector<8x32xf32> to vector<8xf32>
    %89 = vector.shape_cast %88 : vector<8xf32> to vector<8x1xf32>
    %cst_49 = arith.constant 3.200000e+01 : f32
    %90 = vector.broadcast %cst_49 : f32 to vector<8x1xf32>
    %91 = arith.divf %89, %90 : vector<8x1xf32>
    %92 = vector.broadcast %91 : vector<8x1xf32> to vector<8x32xf32>
    %93 = arith.subf %87, %92 : vector<8x32xf32>
    %94 = arith.mulf %93, %93 : vector<8x32xf32>
    %cst_50 = arith.constant dense<0.000000e+00> : vector<8xf32>
    %95 = vector.multi_reduction <add>, %94, %cst_50 [1] : vector<8x32xf32> to vector<8xf32>
    %96 = vector.shape_cast %95 : vector<8xf32> to vector<8x1xf32>
    %cst_51 = arith.constant 3.200000e+01 : f32
    %97 = vector.broadcast %cst_51 : f32 to vector<8x1xf32>
    %98 = arith.divf %96, %97 : vector<8x1xf32>
    %99 = vector.broadcast %91 : vector<8x1xf32> to vector<8x32xf32>
    %100 = arith.subf %87, %99 : vector<8x32xf32>
    %cst_52 = arith.constant 9.99999974E-6 : f32
    %101 = vector.broadcast %cst_52 : f32 to vector<8x1xf32>
    %102 = arith.addf %98, %101 : vector<8x1xf32>
    %103 = math.rsqrt %102 : vector<8x1xf32>
    %104 = vector.broadcast %103 : vector<8x1xf32> to vector<8x32xf32>
    %105 = arith.mulf %100, %104 : vector<8x32xf32>
    %106 = vector.broadcast %9 : vector<1x32xf32> to vector<8x32xf32>
    %107 = arith.mulf %105, %106 : vector<8x32xf32>
    %108 = vector.broadcast %10 : vector<1x32xf32> to vector<8x32xf32>
    %109 = arith.addf %107, %108 : vector<8x32xf32>
    %c9 = arith.constant 9 : index
    %c0_53 = arith.constant 0 : index
    %110 = vector.load %arg6[%c9, %c0_53] : memref<20x32xf32, #tpu.memory_space<vmem>>, vector<1x32xf32>
    %c10 = arith.constant 10 : index
    %c0_54 = arith.constant 0 : index
    %111 = vector.load %arg6[%c10, %c0_54] : memref<20x32xf32, #tpu.memory_space<vmem>>, vector<1x32xf32>
    %c11 = arith.constant 11 : index
    %c0_55 = arith.constant 0 : index
    %112 = vector.load %arg6[%c11, %c0_55] : memref<20x32xf32, #tpu.memory_space<vmem>>, vector<1x32xf32>
    %c12 = arith.constant 12 : index
    %c0_56 = arith.constant 0 : index
    %113 = vector.load %arg6[%c12, %c0_56] : memref<20x32xf32, #tpu.memory_space<vmem>>, vector<1x32xf32>
    %c13 = arith.constant 13 : index
    %c0_57 = arith.constant 0 : index
    %114 = vector.load %arg6[%c13, %c0_57] : memref<20x32xf32, #tpu.memory_space<vmem>>, vector<1x32xf32>
    %c14 = arith.constant 14 : index
    %c0_58 = arith.constant 0 : index
    %115 = vector.load %arg6[%c14, %c0_58] : memref<20x32xf32, #tpu.memory_space<vmem>>, vector<1x32xf32>
    %c15 = arith.constant 15 : index
    %c0_59 = arith.constant 0 : index
    %116 = vector.load %arg6[%c15, %c0_59] : memref<20x32xf32, #tpu.memory_space<vmem>>, vector<1x32xf32>
    %c16 = arith.constant 16 : index
    %c0_60 = arith.constant 0 : index
    %117 = vector.load %arg6[%c16, %c0_60] : memref<20x32xf32, #tpu.memory_space<vmem>>, vector<1x32xf32>
    %c17 = arith.constant 17 : index
    %c0_61 = arith.constant 0 : index
    %118 = vector.load %arg6[%c17, %c0_61] : memref<20x32xf32, #tpu.memory_space<vmem>>, vector<1x32xf32>
    %c4_62 = arith.constant 4 : index
    %c0_63 = arith.constant 0 : index
    %c0_64 = arith.constant 0 : index
    %119 = vector.load %arg2[%c4_62, %c0_63, %c0_64] : memref<8x32x32xf32, #tpu.memory_space<vmem>>, vector<1x32x32xf32>
    %120 = vector.shape_cast %119 : vector<1x32x32xf32> to vector<32x32xf32>
    %cst_65 = arith.constant dense<0.000000e+00> : vector<8x32xf32>
    %121 = tpu.matmul %109, %120, %cst_65 {dimension_numbers = #tpu.dot_dimension_numbers<[1], [0], [0], [1], [0, 0, 1, 1], [], []>} : vector<8x32xf32>, vector<32x32xf32>, vector<8x32xf32> -> vector<8x32xf32>
    %122 = vector.broadcast %110 : vector<1x32xf32> to vector<8x32xf32>
    %123 = arith.addf %121, %122 : vector<8x32xf32>
    %c5_66 = arith.constant 5 : index
    %c0_67 = arith.constant 0 : index
    %c0_68 = arith.constant 0 : index
    %124 = vector.load %arg2[%c5_66, %c0_67, %c0_68] : memref<8x32x32xf32, #tpu.memory_space<vmem>>, vector<1x32x32xf32>
    %125 = vector.shape_cast %124 : vector<1x32x32xf32> to vector<32x32xf32>
    %cst_69 = arith.constant dense<0.000000e+00> : vector<8x32xf32>
    %126 = tpu.matmul %109, %125, %cst_69 {dimension_numbers = #tpu.dot_dimension_numbers<[1], [0], [0], [1], [0, 0, 1, 1], [], []>} : vector<8x32xf32>, vector<32x32xf32>, vector<8x32xf32> -> vector<8x32xf32>
    %127 = vector.broadcast %111 : vector<1x32xf32> to vector<8x32xf32>
    %128 = arith.addf %126, %127 : vector<8x32xf32>
    %c6_70 = arith.constant 6 : index
    %c0_71 = arith.constant 0 : index
    %c0_72 = arith.constant 0 : index
    %129 = vector.load %arg2[%c6_70, %c0_71, %c0_72] : memref<8x32x32xf32, #tpu.memory_space<vmem>>, vector<1x32x32xf32>
    %130 = vector.shape_cast %129 : vector<1x32x32xf32> to vector<32x32xf32>
    %cst_73 = arith.constant dense<0.000000e+00> : vector<8x32xf32>
    %131 = tpu.matmul %109, %130, %cst_73 {dimension_numbers = #tpu.dot_dimension_numbers<[1], [0], [0], [1], [0, 0, 1, 1], [], []>} : vector<8x32xf32>, vector<32x32xf32>, vector<8x32xf32> -> vector<8x32xf32>
    %132 = vector.broadcast %112 : vector<1x32xf32> to vector<8x32xf32>
    %133 = arith.addf %131, %132 : vector<8x32xf32>
    %134 = vector.shape_cast %123 : vector<8x32xf32> to vector<8x4x8xf32>
    %135 = tpu.transpose %134, [1, 0, 2] : vector<8x4x8xf32> -> vector<4x8x8xf32>
    %136 = vector.shape_cast %128 : vector<8x32xf32> to vector<8x4x8xf32>
    %137 = tpu.transpose %136, [1, 0, 2] : vector<8x4x8xf32> -> vector<4x8x8xf32>
    %138 = vector.shape_cast %133 : vector<8x32xf32> to vector<8x4x8xf32>
    %139 = tpu.transpose %138, [1, 0, 2] : vector<8x4x8xf32> -> vector<4x8x8xf32>
    "tpu.trace_start"() <{level = 10 : i32, message = "hle,hme->hlm"}> : () -> ()
    %cst_74 = arith.constant dense<0.000000e+00> : vector<4x8x8xf32>
    %140 = tpu.matmul %135, %137, %cst_74 {dimension_numbers = #tpu.dot_dimension_numbers<[2], [2], [1], [1], [0, 0, 0, 1, 1, 1], [0], [0]>} : vector<4x8x8xf32>, vector<4x8x8xf32>, vector<4x8x8xf32> -> vector<4x8x8xf32>
    "tpu.trace_stop"() : () -> ()
    %cst_75 = arith.constant dense<0xFF800000> : vector<4x8xf32>
    %141 = vector.multi_reduction <maximumf>, %140, %cst_75 [2] : vector<4x8x8xf32> to vector<4x8xf32>
    %142 = vector.shape_cast %141 : vector<4x8xf32> to vector<4x8x1xf32>
    %143 = vector.broadcast %142 : vector<4x8x1xf32> to vector<4x8x8xf32>
    %144 = arith.subf %140, %143 : vector<4x8x8xf32>
    %145 = math.exp %144 : vector<4x8x8xf32>
    %cst_76 = arith.constant dense<0.000000e+00> : vector<4x8xf32>
    %146 = vector.multi_reduction <add>, %145, %cst_76 [2] : vector<4x8x8xf32> to vector<4x8xf32>
    %147 = vector.shape_cast %146 : vector<4x8xf32> to vector<4x8x1xf32>
    %148 = vector.broadcast %147 : vector<4x8x1xf32> to vector<4x8x8xf32>
    %149 = arith.divf %145, %148 : vector<4x8x8xf32>
    "tpu.trace_start"() <{level = 10 : i32, message = "hlm,hme->hle"}> : () -> ()
    %cst_77 = arith.constant dense<0.000000e+00> : vector<4x8x8xf32>
    %150 = tpu.matmul %149, %139, %cst_77 {dimension_numbers = #tpu.dot_dimension_numbers<[2], [1], [1], [2], [0, 0, 0, 1, 1, 2], [0], [0]>} : vector<4x8x8xf32>, vector<4x8x8xf32>, vector<4x8x8xf32> -> vector<4x8x8xf32>
    "tpu.trace_stop"() : () -> ()
    %151 = tpu.transpose %150, [1, 0, 2] : vector<4x8x8xf32> -> vector<8x4x8xf32>
    %152 = vector.shape_cast %151 : vector<8x4x8xf32> to vector<8x32xf32>
    %c7_78 = arith.constant 7 : index
    %c0_79 = arith.constant 0 : index
    %c0_80 = arith.constant 0 : index
    %153 = vector.load %arg2[%c7_78, %c0_79, %c0_80] : memref<8x32x32xf32, #tpu.memory_space<vmem>>, vector<1x32x32xf32>
    %154 = vector.shape_cast %153 : vector<1x32x32xf32> to vector<32x32xf32>
    %cst_81 = arith.constant dense<0.000000e+00> : vector<8x32xf32>
    %155 = tpu.matmul %152, %154, %cst_81 {dimension_numbers = #tpu.dot_dimension_numbers<[1], [0], [0], [1], [0, 0, 1, 1], [], []>} : vector<8x32xf32>, vector<32x32xf32>, vector<8x32xf32> -> vector<8x32xf32>
    %156 = vector.broadcast %113 : vector<1x32xf32> to vector<8x32xf32>
    %157 = arith.addf %155, %156 : vector<8x32xf32>
    %158 = arith.addf %109, %157 : vector<8x32xf32>
    %cst_82 = arith.constant dense<0.000000e+00> : vector<8xf32>
    %159 = vector.multi_reduction <add>, %158, %cst_82 [1] : vector<8x32xf32> to vector<8xf32>
    %160 = vector.shape_cast %159 : vector<8xf32> to vector<8x1xf32>
    %cst_83 = arith.constant 3.200000e+01 : f32
    %161 = vector.broadcast %cst_83 : f32 to vector<8x1xf32>
    %162 = arith.divf %160, %161 : vector<8x1xf32>
    %163 = vector.broadcast %162 : vector<8x1xf32> to vector<8x32xf32>
    %164 = arith.subf %158, %163 : vector<8x32xf32>
    %165 = arith.mulf %164, %164 : vector<8x32xf32>
    %cst_84 = arith.constant dense<0.000000e+00> : vector<8xf32>
    %166 = vector.multi_reduction <add>, %165, %cst_84 [1] : vector<8x32xf32> to vector<8xf32>
    %167 = vector.shape_cast %166 : vector<8xf32> to vector<8x1xf32>
    %cst_85 = arith.constant 3.200000e+01 : f32
    %168 = vector.broadcast %cst_85 : f32 to vector<8x1xf32>
    %169 = arith.divf %167, %168 : vector<8x1xf32>
    %170 = vector.broadcast %162 : vector<8x1xf32> to vector<8x32xf32>
    %171 = arith.subf %158, %170 : vector<8x32xf32>
    %cst_86 = arith.constant 9.99999974E-6 : f32
    %172 = vector.broadcast %cst_86 : f32 to vector<8x1xf32>
    %173 = arith.addf %169, %172 : vector<8x1xf32>
    %174 = math.rsqrt %173 : vector<8x1xf32>
    %175 = vector.broadcast %174 : vector<8x1xf32> to vector<8x32xf32>
    %176 = arith.mulf %171, %175 : vector<8x32xf32>
    %177 = vector.broadcast %115 : vector<1x32xf32> to vector<8x32xf32>
    %178 = arith.mulf %176, %177 : vector<8x32xf32>
    %179 = vector.broadcast %116 : vector<1x32xf32> to vector<8x32xf32>
    %180 = arith.addf %178, %179 : vector<8x32xf32>
    %c1_87 = arith.constant 1 : index
    %c0_88 = arith.constant 0 : index
    %c0_89 = arith.constant 0 : index
    %181 = vector.load %arg3[%c1_87, %c0_88, %c0_89] : memref<2x32x64xf32, #tpu.memory_space<vmem>>, vector<1x32x64xf32>
    %182 = vector.shape_cast %181 : vector<1x32x64xf32> to vector<32x64xf32>
    %cst_90 = arith.constant dense<0.000000e+00> : vector<8x64xf32>
    %183 = tpu.matmul %180, %182, %cst_90 {dimension_numbers = #tpu.dot_dimension_numbers<[1], [0], [0], [1], [0, 0, 1, 1], [], []>} : vector<8x32xf32>, vector<32x64xf32>, vector<8x64xf32> -> vector<8x64xf32>
    %c1_91 = arith.constant 1 : index
    %c0_92 = arith.constant 0 : index
    %c0_93 = arith.constant 0 : index
    %184 = vector.load %arg5[%c1_91, %c0_92, %c0_93] : memref<2x1x64xf32, #tpu.memory_space<vmem>>, vector<1x1x64xf32>
    %185 = vector.shape_cast %184 : vector<1x1x64xf32> to vector<1x64xf32>
    %186 = vector.broadcast %185 : vector<1x64xf32> to vector<8x64xf32>
    %187 = arith.addf %183, %186 : vector<8x64xf32>
    %cst_94 = arith.constant 0.000000e+00 : f32
    %188 = vector.broadcast %cst_94 : f32 to vector<8x64xf32>
    %189 = arith.maximumf %187, %188 : vector<8x64xf32>
    %c1_95 = arith.constant 1 : index
    %c0_96 = arith.constant 0 : index
    %c0_97 = arith.constant 0 : index
    %190 = vector.load %arg4[%c1_95, %c0_96, %c0_97] : memref<2x64x32xf32, #tpu.memory_space<vmem>>, vector<1x64x32xf32>
    %191 = vector.shape_cast %190 : vector<1x64x32xf32> to vector<64x32xf32>
    %cst_98 = arith.constant dense<0.000000e+00> : vector<8x32xf32>
    %192 = tpu.matmul %189, %191, %cst_98 {dimension_numbers = #tpu.dot_dimension_numbers<[1], [0], [0], [1], [0, 0, 1, 1], [], []>} : vector<8x64xf32>, vector<64x32xf32>, vector<8x32xf32> -> vector<8x32xf32>
    %193 = vector.broadcast %114 : vector<1x32xf32> to vector<8x32xf32>
    %194 = arith.addf %192, %193 : vector<8x32xf32>
    %195 = arith.addf %180, %194 : vector<8x32xf32>
    %cst_99 = arith.constant dense<0.000000e+00> : vector<8xf32>
    %196 = vector.multi_reduction <add>, %195, %cst_99 [1] : vector<8x32xf32> to vector<8xf32>
    %197 = vector.shape_cast %196 : vector<8xf32> to vector<8x1xf32>
    %cst_100 = arith.constant 3.200000e+01 : f32
    %198 = vector.broadcast %cst_100 : f32 to vector<8x1xf32>
    %199 = arith.divf %197, %198 : vector<8x1xf32>
    %200 = vector.broadcast %199 : vector<8x1xf32> to vector<8x32xf32>
    %201 = arith.subf %195, %200 : vector<8x32xf32>
    %202 = arith.mulf %201, %201 : vector<8x32xf32>
    %cst_101 = arith.constant dense<0.000000e+00> : vector<8xf32>
    %203 = vector.multi_reduction <add>, %202, %cst_101 [1] : vector<8x32xf32> to vector<8xf32>
    %204 = vector.shape_cast %203 : vector<8xf32> to vector<8x1xf32>
    %cst_102 = arith.constant 3.200000e+01 : f32
    %205 = vector.broadcast %cst_102 : f32 to vector<8x1xf32>
    %206 = arith.divf %204, %205 : vector<8x1xf32>
    %207 = vector.broadcast %199 : vector<8x1xf32> to vector<8x32xf32>
    %208 = arith.subf %195, %207 : vector<8x32xf32>
    %cst_103 = arith.constant 9.99999974E-6 : f32
    %209 = vector.broadcast %cst_103 : f32 to vector<8x1xf32>
    %210 = arith.addf %206, %209 : vector<8x1xf32>
    %211 = math.rsqrt %210 : vector<8x1xf32>
    %212 = vector.broadcast %211 : vector<8x1xf32> to vector<8x32xf32>
    %213 = arith.mulf %208, %212 : vector<8x32xf32>
    %214 = vector.broadcast %117 : vector<1x32xf32> to vector<8x32xf32>
    %215 = arith.mulf %213, %214 : vector<8x32xf32>
    %216 = vector.broadcast %118 : vector<1x32xf32> to vector<8x32xf32>
    %217 = arith.addf %215, %216 : vector<8x32xf32>
    %c18 = arith.constant 18 : index
    %c0_104 = arith.constant 0 : index
    %218 = vector.load %arg6[%c18, %c0_104] : memref<20x32xf32, #tpu.memory_space<vmem>>, vector<1x32xf32>
    %c19 = arith.constant 19 : index
    %c0_105 = arith.constant 0 : index
    %219 = vector.load %arg6[%c19, %c0_105] : memref<20x32xf32, #tpu.memory_space<vmem>>, vector<1x32xf32>
    %cst_106 = arith.constant dense<0.000000e+00> : vector<8xf32>
    %220 = vector.multi_reduction <add>, %217, %cst_106 [1] : vector<8x32xf32> to vector<8xf32>
    %221 = vector.shape_cast %220 : vector<8xf32> to vector<8x1xf32>
    %cst_107 = arith.constant 3.200000e+01 : f32
    %222 = vector.broadcast %cst_107 : f32 to vector<8x1xf32>
    %223 = arith.divf %221, %222 : vector<8x1xf32>
    %224 = vector.broadcast %223 : vector<8x1xf32> to vector<8x32xf32>
    %225 = arith.subf %217, %224 : vector<8x32xf32>
    %226 = arith.mulf %225, %225 : vector<8x32xf32>
    %cst_108 = arith.constant dense<0.000000e+00> : vector<8xf32>
    %227 = vector.multi_reduction <add>, %226, %cst_108 [1] : vector<8x32xf32> to vector<8xf32>
    %228 = vector.shape_cast %227 : vector<8xf32> to vector<8x1xf32>
    %cst_109 = arith.constant 3.200000e+01 : f32
    %229 = vector.broadcast %cst_109 : f32 to vector<8x1xf32>
    %230 = arith.divf %228, %229 : vector<8x1xf32>
    %231 = vector.broadcast %223 : vector<8x1xf32> to vector<8x32xf32>
    %232 = arith.subf %217, %231 : vector<8x32xf32>
    %cst_110 = arith.constant 9.99999974E-6 : f32
    %233 = vector.broadcast %cst_110 : f32 to vector<8x1xf32>
    %234 = arith.addf %230, %233 : vector<8x1xf32>
    %235 = math.rsqrt %234 : vector<8x1xf32>
    %236 = vector.broadcast %235 : vector<8x1xf32> to vector<8x32xf32>
    %237 = arith.mulf %232, %236 : vector<8x32xf32>
    %238 = vector.broadcast %218 : vector<1x32xf32> to vector<8x32xf32>
    %239 = arith.mulf %237, %238 : vector<8x32xf32>
    %240 = vector.broadcast %219 : vector<1x32xf32> to vector<8x32xf32>
    %241 = arith.addf %239, %240 : vector<8x32xf32>
    %c0_111 = arith.constant 0 : index
    %c0_112 = arith.constant 0 : index
    %c0_113 = arith.constant 0 : index
    %242 = vector.load %arg7[%c0_111, %c0_112, %c0_113] : memref<1x8x32xf32, #tpu.memory_space<vmem>>, vector<1x8x32xf32>
    %243 = vector.shape_cast %242 : vector<1x8x32xf32> to vector<8x32xf32>
    %244 = vector.shape_cast %241 : vector<8x32xf32> to vector<1x8x32xf32>
    tpu.vector_store %arg7[%c0_111, %c0_112, %c0_113], %244 {strides = array<i32>} : memref<1x8x32xf32, #tpu.memory_space<vmem>>, vector<1x8x32xf32>,
    return
  }
  func.func @transform_0(%arg0: i32) -> (i32, i32, i32) {
    %c0_i32 = arith.constant 0 : i32
    %c0_i32_0 = arith.constant 0 : i32
    %c0_i32_1 = arith.constant 0 : i32
    return %arg0, %c0_i32, %c0_i32_0 : i32, i32, i32
  }
  func.func @transform_1(%arg0: i32) -> (i32, i32, i32) {
    %c0_i32 = arith.constant 0 : i32
    %c0_i32_0 = arith.constant 0 : i32
    %c0_i32_1 = arith.constant 0 : i32
    %c0_i32_2 = arith.constant 0 : i32
    return %c0_i32, %c0_i32_0, %c0_i32_1 : i32, i32, i32
  }
  func.func @transform_2(%arg0: i32) -> (i32, i32, i32) {
    %c0_i32 = arith.constant 0 : i32
    %c0_i32_0 = arith.constant 0 : i32
    %c0_i32_1 = arith.constant 0 : i32
    %c0_i32_2 = arith.constant 0 : i32
    return %c0_i32, %c0_i32_0, %c0_i32_1 : i32, i32, i32
  }
  func.func @transform_3(%arg0: i32) -> (i32, i32, i32) {
    %c0_i32 = arith.constant 0 : i32
    %c0_i32_0 = arith.constant 0 : i32
    %c0_i32_1 = arith.constant 0 : i32
    %c0_i32_2 = arith.constant 0 : i32
    return %c0_i32, %c0_i32_0, %c0_i32_1 : i32, i32, i32
  }
  func.func @transform_4(%arg0: i32) -> (i32, i32, i32) {
    %c0_i32 = arith.constant 0 : i32
    %c0_i32_0 = arith.constant 0 : i32
    %c0_i32_1 = arith.constant 0 : i32
    %c0_i32_2 = arith.constant 0 : i32
    return %c0_i32, %c0_i32_0, %c0_i32_1 : i32, i32, i32
  }
  func.func @transform_5(%arg0: i32) -> (i32, i32) {
    %c0_i32 = arith.constant 0 : i32
    %c0_i32_0 = arith.constant 0 : i32
    %c0_i32_1 = arith.constant 0 : i32
    return %c0_i32, %c0_i32_0 : i32, i32
  }
  func.func @transform_6(%arg0: i32) -> (i32, i32, i32) {
    %c0_i32 = arith.constant 0 : i32
    %c0_i32_0 = arith.constant 0 : i32
    %c0_i32_1 = arith.constant 0 : i32
    return %arg0, %c0_i32, %c0_i32_0 : i32, i32, i32
  }
}

</mosaic_0001>

<bundles_post_ra>
// kernel: encoder_forward.1
= control target key start
LH: loop header
LB: loop body
LE: loop exit
PB: predicated region body
PF: predicated region fallthrough
CT: control target
= control target key end

     0   :  { %11 = vsyncpa [#allocation3], 0  ;;  %s3502_s0 = inlined_call_operand.vmem [shape: f32[2,8,32], index: 0, kind: input, shape index: {}]   ;;  %s3503_s1 = inlined_call_operand.vmem [shape: f32[8,32,32], index: 1, kind: input, shape index: {}]   ;;  %s3504_s2 = inlined_call_operand.vmem [shape: f32[2,32,64], index: 2, kind: input, shape index: {}]   ;;  %s3505_s3 = inlined_call_operand.vmem [shape: f32[2,64,32], index: 3, kind: input, shape index: {}]   ;;  %s3506_s4 = inlined_call_operand.vmem [shape: f32[2,1,64], index: 4, kind: input, shape index: {}]   ;;  %s3507_s5 = inlined_call_operand.vmem [shape: f32[20,32], index: 5, kind: input, shape index: {}]   ;;  %s3508_s6 = inlined_call_operand.hbm [shape: f32[2,8,32], index: 6, kind: output, shape index: {}]  }
   0x1   :  { %13 = vsyncpa [#allocation3 + $0x1], 0  ;;  %s2704_s21 = smov 0   ;;  %s2706_s22 = smov 0  }
   0x2   :  { %s2708_s23 = smov 0   ;;  %s2710_s24 = smov 0  }
   0x3 LB: > { %s2725_s25 = sadd.s32 4294967295, %s2658_s24   ;;  %s2395_s26 = sadd.s32 4294967294, %s2658_s24   ;;  %s2658_s24 = sphi %s2710_s24, %s3518_s24   ;;  %s2654_s23 = sphi %s2708_s23, %s3517_s23   ;;  %s2650_s22 = sphi %s2706_s22, %s3516_s22   ;;  %s2646_s21 = sphi %s2704_s21, %s3515_s21  }
   0x4   : > { %s2729_s27 = sadd.s32 1, %s2658_s24   ;;  %s157_s28 = sadd.s32 1, %s2654_s23 }
   0x5   : > { %s154_s29 = ssub.s32 %s2658_s24, %s2729_s27  ;;  %p167_p0 = scmp.ne.s32.totalorder %s2654_s23, %s2650_s22 }
   0x6   : > { %p155_p1 = scmp.eq.s32.totalorder %s154_s29, 0  ;;  %p168_p2 = scmp.eq.s32.totalorder %s2725_s25, 1 }
   0x7   : > { %p173_p3 = scmp.ne.s32.totalorder %s2650_s22, %s2646_s21  ;;  %p174_p4 = scmp.eq.s32.totalorder %s2395_s26, 1 }
   0x8   : > { %s2740_s30 = scalar_select %p155_p1, %s2654_s23, %s157_s28  }
   0x9   : > { %p2742_p5 = por %p168_p2, %p167_p0  ;;  %p2746_p6 = por %p174_p4, %p173_p3 }
   0xa   : > { %p2398_p7 = scmp.ge.s32.totalorder %s2658_s24, 1  ;;  %p214_p8 = scmp.lt.s32.totalorder %s2658_s24, 3 }
   0xc   : > { %p215_p9 = pnand %p2398_p7, %p214_p8 }
   0xd   : > { %p243_p10 = scmp.lt.s32.totalorder (!%p215_p9), %s2725_s25, 1  ;;  %s2661_s20 = smov (!%p215_p9), 112  }
   0xe   : > { %218 = sbr.rel (%p215_p9) target bundleno = 4079 (0xfef), region = 44  ;;  %s2662_s26 = smov (!%p215_p9), 120  }
   0xf   : > { %s2665_s17 = smov (!%p215_p9), 24   ;;  %s2666_s18 = smov (!%p215_p9), 16  }
  0x10   : > { %s3509_s28 = smov (!%p215_p9), 8   ;;  %s2479_s15 = sshll.u32 (!%p215_p9), %s2725_s25, 3 }
  0x13   : > { %v2405_v0 = vld [vmem:[%s3503_s1 + $0x38] sm:$0xff]  ;;  %v2404_v1 = vld [vmem:[%s3503_s1 + $0x30] sm:$0xff]  ;;  %v2403_v4 = vld [vmem:[%s3503_s1 + $0x28] sm:$0xff]  ;;  %s244_s19 = scalar_select %p243_p10, %s2725_s25, 1  ;;  %vm262_vm0 = vcmask 261120   ;;  %vm349_vm1 = vcmask 1047556  }
  0x14   : > { %v260_v2 = vld [vmem:[%s3503_s1 + $0x18] sm:$0xff]  ;;  %304 = vmatpush.msra.mxu1 %v2405_v0  ;;  %v259_v3 = vld [vmem:[%s3503_s1 + $0x10] sm:$0xff]  ;;  %v258_v5 = vld [vmem:[%s3503_s1 + $0x8] sm:$0xff]  ;;  %v2663_v17 = vmov 1983009808   ;;  %vm699_vm2 = vcmask 64512  }
  0x15   : > { %278 = vmatpush.msra.mxu0 %v260_v2  ;;  %v2402_v6 = vld [vmem:[%s3503_s1 + $0x20] sm:$0xff]  ;;  %s2400_s9 = sshll.u32 %s244_s19, 3  ;;  %s2660_s19 = smov 104   ;;  %v354_v18 = vunpack.c.l.s4 %v2663_v17  ;;  %v2664_v30 = vmov 1934713408  }
  0x16   : > { %305 = vmatpush.msra.mxu1 %v2404_v1  ;;  %v257_v7 = vld [vmem:[%s3503_s1] sm:$0xff]  ;;  %s246_s14 = scalar_lea.vmem %s3502_s0, %s2400_s9  ;;  %v378_v31 = vunpack.c.l.s4 %v2664_v30  ;;  %s2331_s9 = scalar_lea.hbm %s3508_s6, %s2479_s15 }
  0x17   : > { %279 = vmatpush.msra.mxu0 %v259_v3  ;;  %v2781_v8 = vld [vmem:[%s246_s14] sm:$0xff]  ;;  %v2799_v24 = vunpack.c.0.s8 %v354_v18  ;;  %s2335_s13 = sshll.u32 %s2331_s9, 4  ;;  %s2336_s13 = int_to_ptr.hbm [resolvable:$true] %s2335_s13 }
  0x18   : > { %306 = vmatpush.msra.mxu1 %v2403_v4  ;;  %v2530_v9 = vld [vmem:[%s3507_s5 + $0x1] ss:$0 sm:$0xff]  ;;  %v2531_v10 = vld [vmem:[%s3507_s5] ss:$0 sm:$0xff]  ;;  %v2809_v38 = vunpack.c.0.s8 %v378_v31 }
  0x19   : > { %280 = vmatpush.msra.mxu0 %v258_v5 }
  0x1a   : > { %307 = vmatpush.msra.mxu1 %v2402_v6 }
  0x1b   : > { %281 = vmatpush.msra.mxu0 %v257_v7  ;;  %2406 = vmatmul.msk.f32.vlgmr.msra.gmra.mxu1 %vm262_vm0, %v2781_v8 }
  0x1c   : > { %2401 = vmatmul.msk.f32.vlgmr.msra.gmra.mxu0 %vm262_vm0, %v2781_v8 }
  0x98   : > { %v309_v11 = vpop.f32.mrf.mxu1 }
  0x99   : > { %v283_v12 = vpop.f32.mrf.mxu0  ;;  %v310_v13 = vadd.f32 %v2530_v9, %v309_v11  ;;  %v2410_v9 = vld [vmem:[%s3503_s1 + $0x58] sm:$0xff] }
  0x9a   : > { %v284_v14 = vadd.f32 %v2531_v10, %v283_v12  ;;  %v2409_v10 = vld [vmem:[%s3503_s1 + $0x50] sm:$0xff]  ;;  %330 = vmatpush.msra.mxu2 %v2410_v9 }
  0x9b   : > { %466 = vrot.lane.b32.xlu1 %v310_v13, %s2660_s19  ;;  %463 = vrot.lane.b32.xlu0 %v310_v13, %s2661_s20  ;;  %v471_v25 = vrot.slane %v310_v13, 4 }
  0x9c   : > { %339 = vrot.lane.b32.xlu2 %v284_v14, %s2662_s26  ;;  %v351_v37 = vrot.slane %v284_v14, 4  ;;  %331 = vmatpush.msra.mxu2 %v2409_v10 }
  0xa3   : > { %460 = vrot.lane.b32.xlu0 %v310_v13, %s2662_s26  ;;  %342 = vrot.lane.b32.xlu1 %v284_v14, %s2661_s20 }
  0xa4   : > { %345 = vrot.lane.b32.xlu2 %v284_v14, %s2660_s19 }
  0xf6   : > { %v340_v15 = vpop.permute.xlu2 %339 }
  0xf7   : > { %v363_v19 = vrot.slane %v340_v15, 4 }
  0xfe   : > { %v346_v16 = vpop.permute.xlu2 %345 }
  0xff   : > { %v361_v20 = vrot.slane %v346_v16, 4  ;;  %v364_v26 = vsel %vm349_vm1, %v346_v16, %v363_v19  ;;  %v2408_v19 = vld [vmem:[%s3503_s1 + $0x48] sm:$0xff] }
 0x100   : > { %v372_v32 = vperm.slane %v364_v26, %v2799_v24  ;;  %332 = vmatpush.msra.mxu2 %v2408_v19 }
 0x101   : > { %v362_v28 = vsel %vm349_vm1, %v361_v20, %v340_v15 }
 0x102   : > { %v368_v34 = vperm.slane %v362_v28, %v2799_v24  ;;  %v385_v45 = vrot.slane %v372_v32, 4 }
 0x104   : > { %v373_v49 = vrot.slane %v368_v34, 4 }
 0x10d   : > { %v467_v21 = vpop.permute.xlu1 %466  ;;  %v464_v22 = vpop.permute.xlu0 %463 }
 0x10e   : > { %v469_v23 = vrot.slane %v464_v22, 4  ;;  %v472_v29 = vsel %vm349_vm1, %v464_v22, %v471_v25  ;;  %v481_v35 = vrot.slane %v467_v21, 4 }
 0x10f   : > { %v480_v36 = vperm.slane %v472_v29, %v2799_v24  ;;  %v2407_v29 = vld [vmem:[%s3503_s1 + $0x40] sm:$0xff] }
 0x110   : > { %v470_v27 = vsel %vm349_vm1, %v469_v23, %v310_v13  ;;  %333 = vmatpush.msra.mxu2 %v2407_v29 }
 0x111   : > { %v476_v33 = vperm.slane %v470_v27, %v2799_v24  ;;  %v507_v50 = vrot.slane %v480_v36, 4  ;;  %2411 = vmatmul.msk.f32.vlgmr.msra.gmra.mxu2 %vm262_vm0, %v2781_v8 }
 0x113   : > { %v495_v46 = vrot.slane %v476_v33, 4 }
 0x115   : > { %v461_v39 = vpop.permute.xlu0 %460  ;;  %v343_v40 = vpop.permute.xlu1 %342 }
 0x116   : > { %v482_v41 = vsel %vm349_vm1, %v481_v35, %v461_v39  ;;  %v483_v42 = vrot.slane %v461_v39, 4  ;;  %v348_v43 = vrot.slane %v343_v40, 4  ;;  %v352_v44 = vsel %vm349_vm1, %v343_v40, %v351_v37 }
 0x117   : > { %v488_v47 = vperm.slane %v482_v41, %v2799_v24  ;;  %v360_v48 = vperm.slane %v352_v44, %v2799_v24 }
 0x118   : > { %v484_v51 = vsel %vm349_vm1, %v467_v21, %v483_v42  ;;  %v350_v52 = vsel %vm349_vm1, %v348_v43, %v284_v14 }
 0x119   : > { %v492_v53 = vperm.slane %v484_v51, %v2799_v24  ;;  %v493_v54 = vrot.slane %v488_v47, 4  ;;  %v496_v55 = vsel %vm349_vm1, %v488_v47, %v495_v46  ;;  %v356_v56 = vperm.slane %v350_v52, %v2799_v24 }
 0x11a   : > { %v504_v57 = vperm.slane %v496_v55, %v2809_v38  ;;  %v386_v58 = vsel %vm349_vm1, %v385_v45, %v360_v48  ;;  %v387_v59 = vrot.slane %v360_v48, 4 }
 0x11b   : > { %v494_v60 = vsel %vm349_vm1, %v493_v54, %v476_v33  ;;  %v505_v61 = vrot.slane %v492_v53, 4  ;;  %v508_v62 = vsel %vm349_vm1, %v492_v53, %v507_v50  ;;  %v374_v63 = vsel %vm349_vm1, %v373_v49, %v356_v56 }
 0x11c   : > { %v500_v0 = vperm.slane %v494_v60, %v2809_v38  ;;  %v516_v1 = vperm.slane %v508_v62, %v2809_v38  ;;  %v519_v2 = vrot.slane %v504_v57, 4  ;;  %v375_v3 = vrot.slane %v356_v56, 4 }
 0x11d   : > { %v506_v4 = vsel %vm349_vm1, %v505_v61, %v480_v36  ;;  %v380_v5 = vperm.slane %v374_v63, %v2809_v38  ;;  %v388_v6 = vsel %vm349_vm1, %v372_v32, %v387_v59  ;;  %v392_v7 = vperm.slane %v386_v58, %v2809_v38 }
 0x11e   : > { %v512_v11 = vperm.slane %v506_v4, %v2809_v38  ;;  %v517_v12 = vrot.slane %v500_v0, 4  ;;  %v520_v13 = vsel %vm349_vm1, 0.0, %v519_v2  ;;  %v523_v14 = vrot.slane %v516_v1, 4 }
 0x11f   : > { %v525_v15 = vsel %vm349_vm1, %v519_v2, %v500_v0  ;;  %v530_v16 = vrot.slane %v520_v13, 4  ;;  %v376_v17 = vsel %vm349_vm1, %v368_v34, %v375_v3  ;;  %v396_v18 = vperm.slane %v388_v6, %v2809_v38 }
 0x120   : > { %v518_v20 = vsel %vm349_vm1, 0.0, %v517_v12  ;;  %v521_v21 = vrot.slane %v512_v11, 4  ;;  %v524_v22 = vsel %vm349_vm1, 0.0, %v523_v14  ;;  %v529_v23 = vperm.slane %v525_v15, %v2799_v24 }
 0x121   : > { %v541_v25 = vrot.slane %v524_v22, 4  ;;  %v384_v26 = vperm.slane %v376_v17, %v2809_v38  ;;  %v397_v27 = vrot.slane %v380_v5, 4  ;;  %v401_v28 = vrot.slane %v392_v7, 4 }
 0x122   : > { %v403_v30 = vrot.slane %v396_v18, 4  ;;  %v522_v31 = vsel %vm349_vm1, 0.0, %v521_v21  ;;  %v531_v32 = vsel %vm349_vm1, %v530_v16, %v518_v20  ;;  %v536_v33 = vsel %vm349_vm1, %v523_v14, %v512_v11 }
 0x123   : > { %v398_v34 = vsel %vm349_vm1, 0.0, %v397_v27  ;;  %v399_v35 = vrot.slane %v384_v26, 4  ;;  %v402_v36 = vsel %vm349_vm1, 0.0, %v401_v28  ;;  %v535_v37 = vperm.slane %v531_v32, %v2799_v24 }
 0x124   : > { %v404_v39 = vsel %vm349_vm1, 0.0, %v403_v30  ;;  %v416_v40 = vsel %vm349_vm1, %v403_v30, %v392_v7  ;;  %v540_v41 = vperm.slane %v536_v33, %v2799_v24  ;;  %v542_v42 = vsel %vm349_vm1, %v541_v25, %v522_v31 }
 0x125   : > { %v400_v43 = vsel %vm349_vm1, 0.0, %v399_v35  ;;  %v405_v44 = vsel %vm349_vm1, %v399_v35, %v380_v5  ;;  %v420_v45 = vperm.slane %v416_v40, %v2799_v24  ;;  %v421_v46 = vrot.slane %v404_v39, 4 }
 0x126   : > { %v410_v47 = vrot.slane %v400_v43, 4  ;;  %v546_v48 = vperm.slane %v542_v42, %v2799_v24  ;;  %v549_v49 = vrot.slane %v529_v23, 4  ;;  %v561_v50 = vrot.slane %v540_v41, 4 }
 0x127   : > { %v547_v51 = vrot.slane %v535_v37, 4  ;;  %v409_v52 = vperm.slane %v405_v44, %v2799_v24  ;;  %v422_v53 = vsel %vm349_vm1, %v421_v46, %v402_v36  ;;  %v441_v54 = vrot.slane %v420_v45, 4 }
 0x128   : > { %v550_v55 = vsel %vm349_vm1, %v535_v37, %v549_v49  ;;  %v562_v56 = vsel %vm349_vm1, %v546_v48, %v561_v50  ;;  %v559_v57 = vrot.slane %v546_v48, 4  ;;  %v411_v58 = vsel %vm349_vm1, %v410_v47, %v398_v34 }
 0x129   : > { %v558_v59 = vperm.slane %v550_v55, %v2809_v38  ;;  %v570_v60 = vperm.slane %v562_v56, %v2809_v38  ;;  %v548_v61 = vsel %vm349_vm1, %v547_v51, %v529_v23  ;;  %v415_v62 = vperm.slane %v411_v58, %v2799_v24 }
 0x12a   : > { %v554_v63 = vperm.slane %v548_v61, %v2809_v38  ;;  %v560_v0 = vsel %vm349_vm1, %v559_v57, %v540_v41  ;;  %v426_v1 = vperm.slane %v422_v53, %v2799_v24  ;;  %v429_v2 = vrot.slane %v409_v52, 4  ;;  %v2532_v41 = vld [vmem:[%s3507_s5 + $0x2] ss:$0 sm:$0xff] }
 0x12b   : > { %v575_v3 = vrot.slane %v570_v60, 4  ;;  %v577_v4 = vrot.slane %v558_v59, 4  ;;  %v566_v5 = vperm.slane %v560_v0, %v2809_v38  ;;  %v427_v6 = vrot.slane %v415_v62, 4 }
 0x12c   : > { %v573_v7 = vrot.slane %v554_v63, 4  ;;  %v430_v9 = vsel %vm349_vm1, %v415_v62, %v429_v2  ;;  %v442_v10 = vsel %vm349_vm1, %v426_v1, %v441_v54  ;;  %v439_v11 = vrot.slane %v426_v1, 4 }
 0x12d   : > { %v578_v12 = vsel %vm349_vm1, %v570_v60, %v577_v4  ;;  %v571_v13 = vrot.slane %v566_v5, 4  ;;  %v438_v14 = vperm.slane %v430_v9, %v2809_v38  ;;  %v428_v16 = vsel %vm349_vm1, %v427_v6, %v409_v52 }
 0x12e   : > { %2418 = vmatpush.xpose.msk.msrb.mxu1 %vm699_vm2, %v578_v12  ;;  %v574_v15 = vsel %vm349_vm1, %v566_v5, %v573_v7  ;;  %v440_v17 = vsel %vm349_vm1, %v439_v11, %v420_v45  ;;  %v450_v19 = vperm.slane %v442_v10, %v2809_v38  ;;  %v434_v21 = vperm.slane %v428_v16, %v2809_v38 }
 0x12f   : > { %2414 = vmatpush.xpose.msk.msra.mxu3 %vm699_vm2, %v574_v15  ;;  %v572_v18 = vsel %vm349_vm1, %v571_v13, %v554_v63  ;;  %v457_v20 = vrot.slane %v438_v14, 4  ;;  %v576_v22 = vsel %vm349_vm1, %v575_v3, %v558_v59  ;;  %v446_v23 = vperm.slane %v440_v17, %v2809_v38 }
 0x130   : > { %2412 = vmatpush.xpose.msk.msrb.mxu0 %vm699_vm2, %v572_v18  ;;  %v453_v26 = vrot.slane %v434_v21, 4  ;;  %v455_v30 = vrot.slane %v450_v19, 4 }
 0x131   : > { %v458_v25 = vsel %vm349_vm1, %v450_v19, %v457_v20  ;;  %v451_v27 = vrot.slane %v446_v23, 4 }
 0x132   : > { %2419 = vmatmul.msk.f32.vlgmr.msrb.gmra.mxu1 %vm699_vm2, %v458_v25  ;;  %v454_v28 = vsel %vm349_vm1, %v446_v23, %v453_v26  ;;  %v456_v31 = vsel %vm349_vm1, %v455_v30, %v438_v14 }
 0x133   : > { %2415 = vmatmul.msk.f32.vlgmr.msra.gmra.mxu3 %vm699_vm2, %v454_v28  ;;  %v452_v29 = vsel %vm349_vm1, %v451_v27, %v434_v21 }
 0x134   : > { %2416 = vmatpush.xpose.msk.msra.mxu0 %vm699_vm2, %v576_v22 }
 0x135   : > { %2413 = vmatmul.msk.f32.vlgmr.msrb.gmra.mxu0 %vm699_vm2, %v452_v29 }
 0x13d   : > { %2417 = vmatmul.msk.f32.vlgmr.msra.gmra.mxu0 %vm699_vm2, %v456_v31 }
 0x194   : > { %v335_v42 = vpop.f32.mrf.mxu2 }
 0x195   : > { %v336_v43 = vadd.f32 %v2532_v41, %v335_v42 }
 0x197   : > { %v591_v9 = vrot.slane %v336_v43, 4 }
 0x1af   : > { %v801_v32 = vpop.f32.mrf.mxu1 }
 0x1b0   : > { %v813_v33 = vsel %vm699_vm2, %v801_v32, -inf }
 0x1b1   : > { %814 = vmax.xlane.f32.xlu2 %v813_v33 }
 0x1b2   : > { %v723_v34 = vpop.f32.mrf.mxu0 }
 0x1b3   : > { %v804_v35 = vsel %vm699_vm2, %v723_v34, -inf }
 0x1b4   : > { %805 = vmax.xlane.f32.xlu0 %v804_v35 }
 0x1b6   : > { %v749_v36 = vpop.f32.mrf.mxu3 }
 0x1b7   : > { %v807_v37 = vsel %vm699_vm2, %v749_v36, -inf }
 0x1b8   : > { %808 = vmax.xlane.f32.xlu1 %v807_v37 }
 0x1ba   : > { %v775_v39 = vpop.f32.mrf.mxu0 }
 0x1bb   : > { %v810_v40 = vsel %vm699_vm2, %v775_v39, -inf }
 0x1bc   : > { %811 = vmax.xlane.f32.xlu2 %v810_v40 }
 0x1c8   : > { %580 = vrot.lane.b32.xlu0 %v336_v43, %s2662_s26 }
 0x1d1   : > { %583 = vrot.lane.b32.xlu1 %v336_v43, %s2661_s20 }
 0x1d4   : > { %586 = vrot.lane.b32.xlu2 %v336_v43, %s2660_s19 }
 0x224   : > { %v815_v44 = vpop.xlane.xlu2 %814 }
 0x225   : > { %v819_v47 = vsub.f32 %v801_v32, %v815_v44 }
 0x227   : > { %v806_v45 = vpop.xlane.xlu0 %805  ;;  %v826_v51 = vmul.f32 1.442695, %v819_v47 }
 0x228   : > { %v816_v46 = vsub.f32 %v723_v34, %v806_v45 }
 0x22a   : > { %v820_v48 = vmul.f32 1.442695, %v816_v46 }
 0x22b   : > { %v809_v49 = vpop.xlane.xlu1 %808 }
 0x22c   : > { %2552 = vpow2.f32 %v820_v48  ;;  %v817_v50 = vsub.f32 %v749_v36, %v809_v49 }
 0x22e   : > { %v822_v52 = vmul.f32 1.442695, %v817_v50 }
 0x22f   : > { %v812_v53 = vpop.xlane.xlu2 %811 }
 0x230   : > { %v818_v54 = vsub.f32 %v775_v39, %v812_v53  ;;  %2554 = vpow2.f32 %v822_v52 }
 0x231   : > { %2556 = vpow2.f32 %v826_v51 }
 0x232   : > { %v2915_v55 = vpop.eup %2552  ;;  %v824_v56 = vmul.f32 1.442695, %v818_v54 }
 0x233   : > { %v828_v57 = vsel %vm699_vm2, %v2915_v55, 0.0 }
 0x234   : > { %2558 = vpow2.f32 %v824_v56  ;;  %829 = vadd.xlane.f32.xlu0 %v828_v57 }
 0x236   : > { %v2919_v58 = vpop.eup %2554 }
 0x237   : > { %v2921_v59 = vpop.eup %2556  ;;  %v831_v60 = vsel %vm699_vm2, %v2919_v58, 0.0  ;;  %v587_v61 = vpop.permute.xlu2 %586 }
 0x238   : > { %832 = vadd.xlane.f32.xlu1 %v831_v60  ;;  %v837_v0 = vsel %vm699_vm2, %v2921_v59, 0.0  ;;  %v601_v3 = vrot.slane %v587_v61, 4 }
 0x23a   : > { %v2925_v62 = vpop.eup %2558  ;;  %v581_v63 = vpop.permute.xlu0 %580 }
 0x23b   : > { %v834_v1 = vsel %vm699_vm2, %v2925_v62, 0.0  ;;  %v603_v2 = vrot.slane %v581_v63, 4  ;;  %v602_v5 = vsel %vm349_vm1, %v601_v3, %v581_v63 }
 0x23c   : > { %838 = vadd.xlane.f32.xlu0 %v837_v0  ;;  %835 = vadd.xlane.f32.xlu2 %v834_v1  ;;  %v608_v7 = vperm.slane %v602_v5, %v2799_v24 }
 0x23d   : > { %v604_v4 = vsel %vm349_vm1, %v587_v61, %v603_v2 }
 0x23e   : > { %v612_v6 = vperm.slane %v604_v4, %v2799_v24  ;;  %v613_v14 = vrot.slane %v608_v7, 4 }
 0x240   : > { %v625_v10 = vrot.slane %v612_v6, 4 }
 0x243   : > { %v584_v11 = vpop.permute.xlu1 %583 }
 0x244   : > { %v589_v12 = vrot.slane %v584_v11, 4  ;;  %v592_v13 = vsel %vm349_vm1, %v584_v11, %v591_v9 }
 0x245   : > { %v600_v15 = vperm.slane %v592_v13, %v2799_v24 }
 0x246   : > { %v590_v16 = vsel %vm349_vm1, %v589_v12, %v336_v43 }
 0x247   : > { %v596_v17 = vperm.slane %v590_v16, %v2799_v24  ;;  %v626_v18 = vsel %vm349_vm1, %v625_v10, %v600_v15  ;;  %v627_v19 = vrot.slane %v600_v15, 4 }
 0x248   : > { %v632_v20 = vperm.slane %v626_v18, %v2809_v38 }
 0x249   : > { %v614_v21 = vsel %vm349_vm1, %v613_v14, %v596_v17  ;;  %v615_v22 = vrot.slane %v596_v17, 4  ;;  %v628_v23 = vsel %vm349_vm1, %v612_v6, %v627_v19 }
 0x24a   : > { %v620_v25 = vperm.slane %v614_v21, %v2809_v38  ;;  %v636_v26 = vperm.slane %v628_v23, %v2809_v38  ;;  %v641_v29 = vrot.slane %v632_v20, 4 }
 0x24b   : > { %v616_v27 = vsel %vm349_vm1, %v608_v7, %v615_v22 }
 0x24c   : > { %v624_v28 = vperm.slane %v616_v27, %v2809_v38  ;;  %v643_v30 = vrot.slane %v636_v26, 4  ;;  %v637_v31 = vrot.slane %v620_v25, 4  ;;  %v642_v39 = vsel %vm349_vm1, 0.0, %v641_v29 }
 0x24e   : > { %v639_v32 = vrot.slane %v624_v28, 4  ;;  %v644_v33 = vsel %vm349_vm1, 0.0, %v643_v30  ;;  %v656_v34 = vsel %vm349_vm1, %v643_v30, %v632_v20  ;;  %v638_v45 = vsel %vm349_vm1, 0.0, %v637_v31 }
 0x24f   : > { %v660_v35 = vperm.slane %v656_v34, %v2799_v24  ;;  %v661_v36 = vrot.slane %v644_v33, 4 }
 0x250   : > { %v640_v37 = vsel %vm349_vm1, 0.0, %v639_v32  ;;  %v645_v40 = vsel %vm349_vm1, %v639_v32, %v620_v25 }
 0x251   : > { %v650_v41 = vrot.slane %v640_v37, 4  ;;  %v662_v42 = vsel %vm349_vm1, %v661_v36, %v642_v39  ;;  %v649_v43 = vperm.slane %v645_v40, %v2799_v24  ;;  %v681_v44 = vrot.slane %v660_v35, 4 }
 0x252   : > { %v666_v46 = vperm.slane %v662_v42, %v2799_v24 }
 0x253   : > { %v651_v47 = vsel %vm349_vm1, %v650_v41, %v638_v45  ;;  %v669_v48 = vrot.slane %v649_v43, 4 }
 0x254   : > { %v655_v49 = vperm.slane %v651_v47, %v2799_v24  ;;  %v682_v50 = vsel %vm349_vm1, %v666_v46, %v681_v44  ;;  %v679_v51 = vrot.slane %v666_v46, 4 }
 0x255   : > { %v690_v52 = vperm.slane %v682_v50, %v2809_v38 }
 0x256   : > { %v670_v53 = vsel %vm349_vm1, %v655_v49, %v669_v48  ;;  %v667_v54 = vrot.slane %v655_v49, 4  ;;  %v680_v56 = vsel %vm349_vm1, %v679_v51, %v660_v35 }
 0x257   : > { %v678_v57 = vperm.slane %v670_v53, %v2809_v38  ;;  %v695_v60 = vrot.slane %v690_v52, 4  ;;  %v686_v61 = vperm.slane %v680_v56, %v2809_v38 }
 0x258   : > { %v668_v63 = vsel %vm349_vm1, %v667_v54, %v649_v43 }
 0x259   : > { %v696_v0 = vsel %vm349_vm1, %v695_v60, %v678_v57  ;;  %v674_v1 = vperm.slane %v668_v63, %v2809_v38  ;;  %v691_v2 = vrot.slane %v686_v61, 4  ;;  %v697_v3 = vrot.slane %v678_v57, 4 }
 0x25a   : > { %964 = vmatpush.msrb.mxu0 %v696_v0 }
 0x25b   : > { %v692_v4 = vsel %vm349_vm1, %v691_v2, %v674_v1  ;;  %v698_v5 = vsel %vm349_vm1, %v690_v52, %v697_v3  ;;  %v693_v6 = vrot.slane %v674_v1, 4 }
 0x25c   : > { %918 = vmatpush.msrb.mxu2 %v692_v4  ;;  %987 = vmatpush.msra.mxu1 %v698_v5 }
 0x25d   : > { %v694_v7 = vsel %vm349_vm1, %v686_v61, %v693_v6 }
 0x25e   : > { %941 = vmatpush.msrb.mxu3 %v694_v7 }
 0x2a7   : > { %v830_v9 = vpop.xlane.xlu0 %829 }
 0x2a8   : > { %2560 = vrcp.f32 %v830_v9  ;;  %v851_v16 = vand.u32 2147483648, %v830_v9  ;;  %v849_v19 = vand.u32 2147483647, %v830_v9  ;;  %vm845_vm4 = vweird.f32 %v830_v9 }
 0x2aa   : > { %v852_v25 = vor.u32 1.1754944e-38, %v851_v16  ;;  %vm850_vm6 = vcmp.eq.f32.partialorder %v849_v19, 8.507059e+37 }
 0x2ab   : > { %v833_v10 = vpop.xlane.xlu1 %832 }
 0x2ac   : > { %2562 = vrcp.f32 %v833_v10  ;;  %v864_v22 = vand.u32 2147483647, %v833_v10  ;;  %v866_v27 = vand.u32 2147483648, %v833_v10  ;;  %vm860_vm8 = vweird.f32 %v833_v10 }
 0x2ae   : > { %v2561_v11 = vpop.eup %2560  ;;  %vm2971_vm9 = vcmp.eq.f32.partialorder %v864_v22, 8.507059e+37  ;;  %v867_v39 = vor.u32 1.1754944e-38, %v866_v27 }
 0x2af   : > { %v841_v12 = vmul.f32 %v2561_v11, %v830_v9  ;;  %v839_v13 = vpop.xlane.xlu0 %838  ;;  %v836_v14 = vpop.xlane.xlu2 %835  ;;  %vm846_vm3 = vweird.f32 %v2561_v11 }
 0x2b0   : > { %2564 = vrcp.f32 %v839_v13  ;;  %vm847_vm5 = vmor %vm845_vm4, %vm846_vm3  ;;  %v896_v40 = vand.u32 2147483648, %v839_v13  ;;  %v894_v43 = vand.u32 2147483647, %v839_v13  ;;  %v881_v44 = vand.u32 2147483648, %v836_v14 }
 0x2b1   : > { %v842_v15 = vsub.f32 1.0, %v841_v12  ;;  %2566 = vrcp.f32 %v836_v14  ;;  %v879_v46 = vand.u32 2147483647, %v836_v14  ;;  %vm890_vm13 = vweird.f32 %v839_v13 }
 0x2b2   : > { %v2563_v17 = vpop.eup %2562  ;;  %v897_v49 = vor.u32 1.1754944e-38, %v896_v40  ;;  %vm875_vm15 = vweird.f32 %v836_v14  ;;  %vm895_vm3 = vcmp.eq.f32.partialorder %v894_v43, 8.507059e+37  ;;  %v882_v53 = vor.u32 1.1754944e-38, %v881_v44 }
 0x2b3   : > { %v843_v18 = vmul.f32 %v2561_v11, %v842_v15  ;;  %v856_v20 = vmul.f32 %v2563_v17, %v833_v10  ;;  %vm861_vm7 = vweird.f32 %v2563_v17 }
 0x2b4   : > { %vm862_vm10 = vmor %vm860_vm8, %vm861_vm7  ;;  %vm1117_vm7 = vcmask 195584  }
 0x2b5   : > { %v844_v21 = vadd.f32 %v2561_v11, %v843_v18  ;;  %v857_v26 = vsub.f32 1.0, %v856_v20 }
 0x2b6   : > { %v2565_v23 = vpop.eup %2564 }
 0x2b7   : > { %v2567_v28 = vpop.eup %2566  ;;  %v886_v29 = vmul.f32 %v2565_v23, %v839_v13  ;;  %v848_v30 = vsel %vm847_vm5, %v2561_v11, %v844_v21  ;;  %v858_v31 = vmul.f32 %v2563_v17, %v857_v26  ;;  %vm891_vm11 = vweird.f32 %v2565_v23 }
 0x2b8   : > { %v871_v32 = vmul.f32 %v2567_v28, %v836_v14  ;;  %v853_v33 = vsel %vm850_vm6, %v852_v25, %v848_v30  ;;  %vm876_vm12 = vweird.f32 %v2567_v28  ;;  %vm892_vm14 = vmor %vm890_vm13, %vm891_vm11  ;;  %vm880_vm5 = vcmp.eq.f32.partialorder %v879_v46, 8.507059e+37 }
 0x2b9   : > { %v887_v35 = vsub.f32 1.0, %v886_v29  ;;  %v854_v36 = vmul.f32 %v2915_v55, %v853_v33  ;;  %v859_v37 = vadd.f32 %v2563_v17, %v858_v31  ;;  %vm877_vm4 = vmor %vm875_vm15, %vm876_vm12  ;;  %vm1115_vm6 = vcmask 130048  }
 0x2ba   : > { %v872_v41 = vsub.f32 1.0, %v871_v32  ;;  %vm1223_vm12 = vcmask 523264  }
 0x2bb   : > { %v888_v42 = vmul.f32 %v2565_v23, %v887_v35  ;;  %2420 = vmatmul.msk.f32.vlgmr.msrb.gmra.mxu2 %vm699_vm2, %v854_v36  ;;  %v863_v47 = vsel %vm862_vm10, %v2563_v17, %v859_v37 }
 0x2bc   : > { %v873_v45 = vmul.f32 %v2567_v28, %v872_v41  ;;  %v868_v55 = vsel %vm2971_vm9, %v867_v39, %v863_v47 }
 0x2bd   : > { %v889_v48 = vadd.f32 %v2565_v23, %v888_v42  ;;  %v869_v51 = vmul.f32 %v2919_v58, %v868_v55 }
 0x2be   : > { %v874_v50 = vadd.f32 %v2567_v28, %v873_v45 }
 0x2bf   : > { %v893_v52 = vsel %vm892_vm14, %v2565_v23, %v889_v48  ;;  %2421 = vmatmul.msk.f32.vlgmr.msrb.gmra.mxu3 %vm699_vm2, %v869_v51 }
 0x2c0   : > { %v898_v54 = vsel %vm895_vm3, %v897_v49, %v893_v52  ;;  %v878_v56 = vsel %vm877_vm4, %v2567_v28, %v874_v50 }
 0x2c1   : > { %v883_v57 = vsel %vm880_vm5, %v882_v53, %v878_v56  ;;  %v899_v60 = vmul.f32 %v2921_v59, %v898_v54 }
 0x2c2   : > { %v884_v61 = vmul.f32 %v2925_v62, %v883_v57 }
 0x2c3   : > { %2423 = vmatmul.msk.f32.vlgmr.msra.gmra.mxu1 %vm699_vm2, %v899_v60 }
 0x2c4   : > { %2422 = vmatmul.msk.f32.vlgmr.msrb.gmra.mxu0 %vm699_vm2, %v884_v61 }
 0x33e   : > { %v920_v63 = vpop.f32.mrf.mxu2 }
 0x33f   : > { %v994_v58 = vrot.slane %v920_v63, 4 }
 0x340   : > { %v989_v0 = vpop.f32.mrf.mxu1 }
 0x341   : > { %v966_v1 = vpop.f32.mrf.mxu0  ;;  %v1004_v2 = vrot.slane %v989_v0, 4 }
 0x342   : > { %v992_v3 = vrot.slane %v966_v1, 4  ;;  %v995_v4 = vsel %vm349_vm1, %v966_v1, %v994_v58  ;;  %v943_v6 = vpop.f32.mrf.mxu3 }
 0x343   : > { %v1003_v5 = vperm.slane %v995_v4, %v2799_v24  ;;  %v1005_v59 = vsel %vm349_vm1, %v1004_v2, %v943_v6  ;;  %v1006_v62 = vrot.slane %v943_v6, 4  ;;  %v2426_v4 = vld [vmem:[%s3503_s1 + $0x70] sm:$0xff]  ;;  %v2424_v6 = vld [vmem:[%s3503_s1 + $0x60] sm:$0xff] }
 0x344   : > { %v993_v7 = vsel %vm349_vm1, %v992_v3, %v920_v63  ;;  %v1011_v10 = vperm.slane %v1005_v59, %v2799_v24  ;;  %v2427_v3 = vld [vmem:[%s3503_s1 + $0x78] sm:$0xff] }
 0x345   : > { %v999_v9 = vperm.slane %v993_v7, %v2799_v24  ;;  %v1007_v11 = vsel %vm349_vm1, %v989_v0, %v1006_v62  ;;  %v1030_v13 = vrot.slane %v1003_v5, 4  ;;  %1140 = vmatpush.msra.mxu2 %v2427_v3 }
 0x346   : > { %v1015_v14 = vperm.slane %v1007_v11, %v2799_v24  ;;  %v1016_v15 = vrot.slane %v1011_v10, 4 }
 0x347   : > { %v1018_v12 = vrot.slane %v999_v9, 4  ;;  %1141 = vmatpush.msra.mxu2 %v2426_v4 }
 0x348   : > { %v1017_v16 = vsel %vm349_vm1, %v1016_v15, %v999_v9  ;;  %v1028_v18 = vrot.slane %v1015_v14, 4  ;;  %v1031_v19 = vsel %vm349_vm1, %v1015_v14, %v1030_v13 }
 0x349   : > { %v1019_v17 = vsel %vm349_vm1, %v1011_v10, %v1018_v12  ;;  %v1023_v20 = vperm.slane %v1017_v16, %v2809_v38  ;;  %v1039_v22 = vperm.slane %v1031_v19, %v2809_v38  ;;  %v2533_v12 = vld [vmem:[%s3507_s5 + $0x3] ss:$0 sm:$0xff] }
 0x34a   : > { %v1027_v21 = vperm.slane %v1019_v17, %v2809_v38  ;;  %v1029_v23 = vsel %vm349_vm1, %v1028_v18, %v1003_v5  ;;  %v2425_v5 = vld [vmem:[%s3503_s1 + $0x68] sm:$0xff]  ;;  %v2668_v17 = vmov 32.0  }
 0x34b   : > { %v1035_v25 = vperm.slane %v1029_v23, %v2809_v38  ;;  %v1040_v26 = vrot.slane %v1023_v20, 4  ;;  %v1046_v28 = vrot.slane %v1039_v22, 4  ;;  %1142 = vmatpush.msra.mxu2 %v2425_v5  ;;  %2568 = vrcp.f32 %v2668_v17  ;;  %v2431_v17 = vld [vmem:[%s3503_s1 + $0x80] sm:$0xff] }
 0x34c   : > { %v1042_v27 = vrot.slane %v1027_v21, 4 }
 0x34d   : > { %v1041_v29 = vsel %vm349_vm1, 0.0, %v1040_v26  ;;  %v1044_v31 = vrot.slane %v1035_v25, 4  ;;  %v1047_v32 = vsel %vm349_vm1, 0.0, %v1046_v28  ;;  %v1059_v36 = vsel %vm349_vm1, %v1046_v28, %v1035_v25  ;;  %1143 = vmatpush.msra.mxu2 %v2424_v6 }
 0x34e   : > { %v1043_v30 = vsel %vm349_vm1, 0.0, %v1042_v27  ;;  %v1048_v33 = vsel %vm349_vm1, %v1042_v27, %v1023_v20  ;;  %v1064_v35 = vrot.slane %v1047_v32, 4  ;;  %v1063_v40 = vperm.slane %v1059_v36, %v2799_v24  ;;  %v1182_v32 = vld [vmem:[%s3504_s2] sm:$0xff] }
 0x34f   : > { %v1053_v34 = vrot.slane %v1043_v30, 4  ;;  %v1052_v37 = vperm.slane %v1048_v33, %v2799_v24  ;;  %v1045_v39 = vsel %vm349_vm1, 0.0, %v1044_v31  ;;  %v1184_v30 = vld [vmem:[%s3504_s2 + $0x10] sm:$0xff]  ;;  %v1183_v31 = vld [vmem:[%s3504_s2 + $0x8] sm:$0xff]  ;;  %v1221_v33 = vld [vmem:[%s3505_s3 + $0x38] sm:$0xff] }
 0x350   : > { %v1065_v42 = vsel %vm349_vm1, %v1064_v35, %v1045_v39  ;;  %v1084_v46 = vrot.slane %v1063_v40, 4  ;;  %1235 = vmatpush.msra.mxu0 %v1221_v33  ;;  %v1219_v35 = vld [vmem:[%s3505_s3 + $0x28] sm:$0xff]  ;;  %v1218_v39 = vld [vmem:[%s3505_s3 + $0x20] sm:$0xff] }
 0x351   : > { %v1054_v41 = vsel %vm349_vm1, %v1053_v34, %v1041_v29  ;;  %v1069_v44 = vperm.slane %v1065_v42, %v2799_v24  ;;  %v1072_v45 = vrot.slane %v1052_v37, 4  ;;  %v2569_v18 = vpop.eup %2568  ;;  %v1185_v29 = vld [vmem:[%s3504_s2 + $0x18] sm:$0xff]  ;;  %v1220_v34 = vld [vmem:[%s3505_s3 + $0x30] sm:$0xff]  ;;  %v2539_v33 = vld [vmem:[%s3507_s5 + $0x8] ss:$0 sm:$0xff] }
 0x352   : > { %v1058_v43 = vperm.slane %v1054_v41, %v2799_v24  ;;  %v1153_v19 = vmul.f32 32.0, %v2569_v18  ;;  %vm1157_vm8 = vweird.f32 %v2569_v18  ;;  %1205 = vmatpush.msra.mxu3 %v1185_v29  ;;  %1236 = vmatpush.msra.mxu0 %v1220_v34  ;;  %v1217_v41 = vld [vmem:[%s3505_s3 + $0x18] sm:$0xff] }
 0x353   : > { %v1085_v48 = vsel %vm349_vm1, %v1069_v44, %v1084_v46  ;;  %v1082_v49 = vrot.slane %v1069_v44, 4 }
 0x354   : > { %v1073_v47 = vsel %vm349_vm1, %v1058_v43, %v1072_v45  ;;  %v1070_v55 = vrot.slane %v1058_v43, 4  ;;  %v1093_v51 = vperm.slane %v1085_v48, %v2809_v38  ;;  %v1154_v20 = vsub.f32 1.0, %v1153_v19  ;;  %1206 = vmatpush.msra.mxu3 %v1184_v30  ;;  %1237 = vmatpush.msra.mxu0 %v1219_v35  ;;  %v2534_v48 = vld [vmem:[%s3507_s5 + $0x5] ss:$0 sm:$0xff]  ;;  %v2538_v30 = vld [vmem:[%s3507_s5 + $0x7] ss:$0 sm:$0xff] }
 0x355   : > { %v1081_v50 = vperm.slane %v1073_v47, %v2809_v38  ;;  %v1083_v53 = vsel %vm349_vm1, %v1082_v49, %v1063_v40  ;;  %v2441_v19 = vld [vmem:[%s3503_s1 + $0xc0] sm:$0xff] }
 0x356   : > { %v1071_v52 = vsel %vm349_vm1, %v1070_v55, %v1052_v37  ;;  %v1098_v56 = vrot.slane %v1093_v51, 4  ;;  %v1089_v60 = vperm.slane %v1083_v53, %v2809_v38  ;;  %v1155_v21 = vmul.f32 %v2569_v18, %v1154_v20  ;;  %1207 = vmatpush.msra.mxu3 %v1183_v31  ;;  %1238 = vmatpush.msra.mxu0 %v1218_v39  ;;  %v1216_v53 = vld [vmem:[%s3505_s3 + $0x10] sm:$0xff] }
 0x357   : > { %v1100_v54 = vrot.slane %v1081_v50, 4  ;;  %v1077_v57 = vperm.slane %v1071_v52, %v2809_v38 }
 0x358   : > { %v1099_v63 = vsel %vm349_vm1, %v1098_v56, %v1081_v50  ;;  %v1094_v58 = vrot.slane %v1089_v60, 4  ;;  %v1156_v22 = vadd.f32 %v2569_v18, %v1155_v21  ;;  %1208 = vmatpush.msra.mxu3 %v1182_v32  ;;  %1239 = vmatpush.msra.mxu0 %v1217_v41  ;;  %v2535_v50 = vld [vmem:[%s3507_s5 + $0x6] ss:$0 sm:$0xff] }
 0x359   : > { %v1101_v61 = vsel %vm349_vm1, %v1093_v51, %v1100_v54  ;;  %v1096_v0 = vrot.slane %v1077_v57, 4  ;;  %1107 = vrot.lane.b32.xlu0 %v1099_v63, %s2666_s18  ;;  %v1215_v54 = vld [vmem:[%s3505_s3 + $0x8] sm:$0xff]  ;;  %v1214_v56 = vld [vmem:[%s3505_s3] sm:$0xff] }
 0x35a   : > { %1111 = vrot.lane.b32.xlu2 %v1101_v61, %s2665_s17  ;;  %v1095_v2 = vsel %vm349_vm1, %v1094_v58, %v1077_v57  ;;  %v3049_v23 = vsel %vm1157_vm8, %v2569_v18, %v1156_v22  ;;  %1240 = vmatpush.msra.mxu0 %v1216_v53  ;;  %v2536_v57 = vld [vmem:[%s3506_s4] ss:$0 sm:$0xff]  ;;  %v2537_v58 = vld [vmem:[%s3507_s5 + $0x4] ss:$0 sm:$0xff] }
 0x35b   : > { %v1097_v1 = vsel %vm349_vm1, %v1089_v60, %v1096_v0  ;;  %v2436_v18 = vld [vmem:[%s3503_s1 + $0xa0] sm:$0xff] }
 0x35c   : > { %1103 = vrot.lane.b32.xlu1 %v1097_v1, %s3509_s28  ;;  %1241 = vmatpush.msra.mxu0 %v1215_v54 }
 0x35e   : > { %1242 = vmatpush.msra.mxu0 %v1214_v56 }
 0x3b4   : > { %v1112_v9 = vpop.permute.xlu2 %1111 }
 0x3cb   : > { %v1108_v59 = vpop.permute.xlu0 %1107 }
 0x3ce   : > { %v1104_v7 = vpop.permute.xlu1 %1103 }
 0x3cf   : > { %v1114_v62 = vsel %vm699_vm2, %v1095_v2, %v1104_v7 }
 0x3d0   : > { %v1116_v10 = vsel %vm1115_vm6, %v1114_v62, %v1108_v59  ;;  %v2434_v62 = vld [vmem:[%s3503_s1 + $0x98] sm:$0xff] }
 0x3d1   : > { %v1118_v11 = vsel %vm1117_vm7, %v1116_v10, %v1112_v9  ;;  %v2439_v9 = vld [vmem:[%s3503_s1 + $0xb8] sm:$0xff]  ;;  %1304 = vmatpush.msrb.mxu1 %v2434_v62 }
 0x3d2   : > { %2428 = vmatmul.msk.f32.vlgmr.msra.gmra.mxu2 %vm262_vm0, %v1118_v11  ;;  %v2444_v10 = vld [vmem:[%s3503_s1 + $0xd8] sm:$0xff]  ;;  %v2433_v11 = vld [vmem:[%s3503_s1 + $0x90] sm:$0xff] }
 0x3d3   : > { %1330 = vmatpush.msrb.mxu2 %v2439_v9  ;;  %1356 = vmatpush.msrb.mxu3 %v2444_v10 }
 0x3d4   : > { %1305 = vmatpush.msrb.mxu1 %v2433_v11 }
 0x455   : > { %v1145_v13 = vpop.f32.mrf.mxu2 }
 0x456   : > { %v1146_v14 = vadd.f32 %v2533_v12, %v1145_v13  ;;  %v2438_v12 = vld [vmem:[%s3503_s1 + $0xb0] sm:$0xff] }
 0x457   : > { %v2443_v13 = vld [vmem:[%s3503_s1 + $0xd0] sm:$0xff]  ;;  %1331 = vmatpush.msrb.mxu2 %v2438_v12 }
 0x458   : > { %v1148_v15 = vadd.f32 %v1146_v14, %v2781_v8  ;;  %v2432_v14 = vld [vmem:[%s3503_s1 + $0x88] sm:$0xff]  ;;  %1357 = vmatpush.msrb.mxu3 %v2443_v13 }
 0x459   : > { %1306 = vmatpush.msrb.mxu1 %v2432_v14 }
 0x45a   : > { %v1149_v16 = vsel %vm262_vm0, %v1148_v15, 0.0 }
 0x45b   : > { %1150 = vadd.xlane.f32.xlu0 %v1149_v16  ;;  %v2442_v16 = vld [vmem:[%s3503_s1 + $0xc8] sm:$0xff]  ;;  %1307 = vmatpush.msrb.mxu1 %v2431_v17 }
 0x45c   : > { %1358 = vmatpush.msrb.mxu3 %v2442_v16 }
 0x45e   : > { %1359 = vmatpush.msrb.mxu3 %v2441_v19 }
 0x4ce   : > { %v1151_v25 = vpop.xlane.xlu0 %1150 }
 0x4cf   : > { %v1159_v26 = vmul.f32 %v3049_v23, %v1151_v25 }
 0x4d1   : > { %v1160_v27 = vsub.f32 %v1148_v15, %v1159_v26  ;;  %v2437_v15 = vld [vmem:[%s3503_s1 + $0xa8] sm:$0xff] }
 0x4d2   : > { %1332 = vmatpush.msrb.mxu2 %v2437_v15 }
 0x4d3   : > { %v1161_v28 = vmul.f32 %v1160_v27, %v1160_v27 }
 0x4d4   : > { %1333 = vmatpush.msrb.mxu2 %v2436_v18 }
 0x4d5   : > { %v1162_v8 = vsel %vm262_vm0, %v1161_v28, 0.0 }
 0x4d6   : > { %1163 = vadd.xlane.f32.xlu1 %v1162_v8 }
 0x549   : > { %v1164_v36 = vpop.xlane.xlu1 %1163 }
 0x54a   : > { %v1165_v37 = vmul.f32 %v1164_v36, %v3049_v23  ;;  %v2541_v36 = vld [vmem:[%s3507_s5 + $0xa] ss:$0 sm:$0xff] }
 0x54c   : > { %v1166_v40 = vadd.f32 1e-05, %v1165_v37 }
 0x54e   : > { %2570 = vrsqrt.f32 %v1166_v40  ;;  %vm1173_vm10 = vweird.f32 %v1166_v40 }
 0x554   : > { %v2571_v42 = vpop.eup %2570 }
 0x555   : > { %v1168_v43 = vmul.f32 %v2571_v42, %v1166_v40  ;;  %vm1174_vm9 = vweird.f32 %v2571_v42  ;;  %v2540_v40 = vld [vmem:[%s3507_s5 + $0x9] ss:$0 sm:$0xff] }
 0x556   : > { %vm1175_vm11 = vmor %vm1173_vm10, %vm1174_vm9 }
 0x557   : > { %v1169_v44 = vmul.f32 %v2571_v42, %v1168_v43 }
 0x559   : > { %v1170_v45 = vmul.f32 0.5, %v1169_v44 }
 0x55b   : > { %v1171_v46 = vsub.f32 1.5, %v1170_v45 }
 0x55d   : > { %v1172_v47 = vmul.f32 %v2571_v42, %v1171_v46 }
 0x55f   : > { %v1176_v55 = vsel %vm1175_vm11, %v2571_v42, %v1172_v47 }
 0x560   : > { %v1177_v49 = vmul.f32 %v1176_v55, %v1160_v27 }
 0x562   : > { %v1179_v51 = vmul.f32 %v2534_v48, %v1177_v49 }
 0x564   : > { %v1181_v52 = vadd.f32 %v2535_v50, %v1179_v51 }
 0x566   : > { %2429 = vmatmul.msk.f32.vlgmr.msra.gmra.mxu3 %vm262_vm0, %v1181_v52 }
 0x5e9   : > { %v1210_v60 = vpop.f32.mrf.mxu3 }
 0x5ea   : > { %v1211_v61 = vadd.f32 %v2536_v57, %v1210_v60 }
 0x5ec   : > { %v1213_v63 = vmax.f32 %v1211_v61, 0.0 }
 0x5ee   : > { %2430 = vmatmul.msk.f32.vlgmr.msra.gmra.mxu0 %vm1223_vm12, %v1213_v63 }
 0x66b   : > { %v1244_v0 = vpop.f32.mrf.mxu0 }
 0x66c   : > { %v1245_v1 = vadd.f32 %v2537_v58, %v1244_v0 }
 0x66e   : > { %v1247_v2 = vadd.f32 %v1245_v1, %v1181_v52 }
 0x670   : > { %v1248_v3 = vsel %vm262_vm0, %v1247_v2, 0.0 }
 0x671   : > { %1249 = vadd.xlane.f32.xlu2 %v1248_v3 }
 0x6e4   : > { %v1250_v4 = vpop.xlane.xlu2 %1249 }
 0x6e5   : > { %v1251_v5 = vmul.f32 %v1250_v4, %v3049_v23 }
 0x6e7   : > { %v1252_v6 = vsub.f32 %v1247_v2, %v1251_v5 }
 0x6e9   : > { %v1253_v7 = vmul.f32 %v1252_v6, %v1252_v6 }
 0x6eb   : > { %v1254_v59 = vsel %vm262_vm0, %v1253_v7, 0.0 }
 0x6ec   : > { %1255 = vadd.xlane.f32.xlu0 %v1254_v59 }
 0x75f   : > { %v1256_v20 = vpop.xlane.xlu0 %1255 }
 0x760   : > { %v1257_v21 = vmul.f32 %v1256_v20, %v3049_v23 }
 0x762   : > { %v1258_v22 = vadd.f32 1e-05, %v1257_v21 }
 0x764   : > { %2572 = vrsqrt.f32 %v1258_v22  ;;  %vm1265_vm14 = vweird.f32 %v1258_v22 }
 0x76a   : > { %v2573_v25 = vpop.eup %2572 }
 0x76b   : > { %v1260_v26 = vmul.f32 %v2573_v25, %v1258_v22  ;;  %vm1266_vm13 = vweird.f32 %v2573_v25 }
 0x76c   : > { %vm1267_vm15 = vmor %vm1265_vm14, %vm1266_vm13 }
 0x76d   : > { %v1261_v27 = vmul.f32 %v2573_v25, %v1260_v26 }
 0x76f   : > { %v1262_v28 = vmul.f32 0.5, %v1261_v27 }
 0x771   : > { %v1263_v8 = vsub.f32 1.5, %v1262_v28 }
 0x773   : > { %v1264_v29 = vmul.f32 %v2573_v25, %v1263_v8 }
 0x775   : > { %v1268_v31 = vsel %vm1267_vm15, %v2573_v25, %v1264_v29 }
 0x776   : > { %v1269_v32 = vmul.f32 %v1268_v31, %v1252_v6 }
 0x778   : > { %v1271_v34 = vmul.f32 %v2538_v30, %v1269_v32 }
 0x77a   : > { %v3150_v35 = vadd.f32 %v2539_v33, %v1271_v34 }
 0x77c   : > { %2435 = vmatmul.msk.f32.vlgmr.msrb.gmra.mxu1 %vm262_vm0, %v3150_v35  ;;  %2440 = vmatmul.msk.f32.vlgmr.msrb.gmra.mxu2 %vm262_vm0, %v3150_v35 }
 0x77d   : > { %2445 = vmatmul.msk.f32.vlgmr.msrb.gmra.mxu3 %vm262_vm0, %v3150_v35 }
 0x7f9   : > { %v1309_v41 = vpop.f32.mrf.mxu1 }
 0x7fa   : > { %v1310_v42 = vadd.f32 %v2540_v40, %v1309_v41 }
 0x7fc   : > { %v1376_v59 = vrot.slane %v1310_v42, 4 }
 0x7ff   : > { %v1335_v37 = vpop.f32.mrf.mxu2 }
 0x800   : > { %v1336_v39 = vadd.f32 %v2541_v36, %v1335_v37 }
 0x802   : > { %1491 = vrot.lane.b32.xlu0 %v1336_v39, %s2660_s19  ;;  %1488 = vrot.lane.b32.xlu2 %v1336_v39, %s2661_s20  ;;  %v1496_v45 = vrot.slane %v1336_v39, 4 }
 0x803   : > { %1485 = vrot.lane.b32.xlu1 %v1336_v39, %s2662_s26 }
 0x80a   : > { %1371 = vrot.lane.b32.xlu2 %v1310_v42, %s2660_s19  ;;  %1368 = vrot.lane.b32.xlu0 %v1310_v42, %s2661_s20 }
 0x80b   : > { %1365 = vrot.lane.b32.xlu1 %v1310_v42, %s2662_s26 }
 0x85c   : > { %v1489_v43 = vpop.permute.xlu2 %1488 }
 0x85d   : > { %v1494_v44 = vrot.slane %v1489_v43, 4  ;;  %v1497_v47 = vsel %vm349_vm1, %v1489_v43, %v1496_v45 }
 0x85e   : > { %v1505_v49 = vperm.slane %v1497_v47, %v2799_v24 }
 0x85f   : > { %v1495_v46 = vsel %vm349_vm1, %v1494_v44, %v1336_v39 }
 0x860   : > { %v1501_v48 = vperm.slane %v1495_v46, %v2799_v24  ;;  %v1532_v60 = vrot.slane %v1505_v49, 4 }
 0x862   : > { %v1520_v54 = vrot.slane %v1501_v48, 4 }
 0x864   : > { %v1372_v61 = vpop.permute.xlu2 %1371 }
 0x865   : > { %v1386_v4 = vrot.slane %v1372_v61, 4 }
 0x874   : > { %v1492_v55 = vpop.permute.xlu0 %1491 }
 0x875   : > { %v1506_v50 = vrot.slane %v1492_v55, 4  ;;  %v1486_v51 = vpop.permute.xlu1 %1485 }
 0x876   : > { %v1508_v52 = vrot.slane %v1486_v51, 4 }
 0x877   : > { %v1507_v53 = vsel %vm349_vm1, %v1506_v50, %v1486_v51 }
 0x878   : > { %v1509_v56 = vsel %vm349_vm1, %v1492_v55, %v1508_v52  ;;  %v1513_v57 = vperm.slane %v1507_v53, %v2799_v24 }
 0x879   : > { %v1517_v63 = vperm.slane %v1509_v56, %v2799_v24 }
 0x87a   : > { %v1518_v58 = vrot.slane %v1513_v57, 4  ;;  %v1521_v0 = vsel %vm349_vm1, %v1513_v57, %v1520_v54 }
 0x87b   : > { %v1529_v1 = vperm.slane %v1521_v0, %v2809_v38  ;;  %v1530_v2 = vrot.slane %v1517_v63, 4  ;;  %v1533_v3 = vsel %vm349_vm1, %v1517_v63, %v1532_v60 }
 0x87c   : > { %v1519_v5 = vsel %vm349_vm1, %v1518_v58, %v1501_v48  ;;  %v1541_v6 = vperm.slane %v1533_v3, %v2809_v38  ;;  %v1369_v7 = vpop.permute.xlu0 %1368 }
 0x87d   : > { %v1525_v62 = vperm.slane %v1519_v5, %v2809_v38  ;;  %v1531_v9 = vsel %vm349_vm1, %v1530_v2, %v1505_v49  ;;  %v1544_v10 = vrot.slane %v1529_v1, 4  ;;  %v1374_v11 = vrot.slane %v1369_v7, 4  ;;  %v1366_v12 = vpop.permute.xlu1 %1365 }
 0x87e   : > { %v1537_v13 = vperm.slane %v1531_v9, %v2809_v38  ;;  %v1548_v14 = vrot.slane %v1541_v6, 4  ;;  %v1377_v15 = vsel %vm349_vm1, %v1369_v7, %v1376_v59  ;;  %v1387_v16 = vsel %vm349_vm1, %v1386_v4, %v1366_v12 }
 0x87f   : > { %v1542_v17 = vrot.slane %v1525_v62, 4  ;;  %v1545_v18 = vsel %vm349_vm1, 0.0, %v1544_v10  ;;  %v1550_v19 = vsel %vm349_vm1, %v1544_v10, %v1525_v62  ;;  %v1375_v20 = vsel %vm349_vm1, %v1374_v11, %v1310_v42 }
 0x880   : > { %v1546_v21 = vrot.slane %v1537_v13, 4  ;;  %v1549_v22 = vsel %vm349_vm1, 0.0, %v1548_v14  ;;  %v1554_v25 = vperm.slane %v1550_v19, %v2799_v24  ;;  %v1555_v26 = vrot.slane %v1545_v18, 4 }
 0x881   : > { %v1543_v27 = vsel %vm349_vm1, 0.0, %v1542_v17  ;;  %v1561_v28 = vsel %vm349_vm1, %v1548_v14, %v1537_v13  ;;  %v1566_v8 = vrot.slane %v1549_v22, 4  ;;  %v1381_v29 = vperm.slane %v1375_v20, %v2799_v24 }
 0x882   : > { %v1547_v30 = vsel %vm349_vm1, 0.0, %v1546_v21  ;;  %v1556_v31 = vsel %vm349_vm1, %v1555_v26, %v1543_v27  ;;  %v1565_v32 = vperm.slane %v1561_v28, %v2799_v24  ;;  %v1385_v33 = vperm.slane %v1377_v15, %v2799_v24 }
 0x883   : > { %v1400_v34 = vrot.slane %v1381_v29, 4  ;;  %v1388_v36 = vrot.slane %v1366_v12, 4  ;;  %v1393_v37 = vperm.slane %v1387_v16, %v2799_v24  ;;  %v1560_v39 = vperm.slane %v1556_v31, %v2799_v24 }
 0x884   : > { %v1412_v40 = vrot.slane %v1385_v33, 4  ;;  %v1567_v41 = vsel %vm349_vm1, %v1566_v8, %v1547_v30  ;;  %v1574_v42 = vrot.slane %v1554_v25, 4  ;;  %v1586_v43 = vrot.slane %v1565_v32, 4 }
 0x885   : > { %v1389_v44 = vsel %vm349_vm1, %v1372_v61, %v1388_v36  ;;  %v1398_v45 = vrot.slane %v1393_v37, 4  ;;  %v1401_v46 = vsel %vm349_vm1, %v1393_v37, %v1400_v34  ;;  %v1571_v47 = vperm.slane %v1567_v41, %v2799_v24 }
 0x886   : > { %v1397_v48 = vperm.slane %v1389_v44, %v2799_v24  ;;  %v1409_v55 = vperm.slane %v1401_v46, %v2809_v38  ;;  %v1575_v49 = vsel %vm349_vm1, %v1560_v39, %v1574_v42  ;;  %v1572_v50 = vrot.slane %v1560_v39, 4 }
 0x887   : > { %v1399_v51 = vsel %vm349_vm1, %v1398_v45, %v1381_v29  ;;  %v1583_v52 = vperm.slane %v1575_v49, %v2809_v38  ;;  %v1587_v53 = vsel %vm349_vm1, %v1571_v47, %v1586_v43  ;;  %v1584_v54 = vrot.slane %v1571_v47, 4 }
 0x888   : > { %v1405_v56 = vperm.slane %v1399_v51, %v2809_v38  ;;  %v1410_v57 = vrot.slane %v1397_v48, 4  ;;  %v1413_v60 = vsel %vm349_vm1, %v1397_v48, %v1412_v40  ;;  %v1424_v61 = vrot.slane %v1409_v55, 4 }
 0x889   : > { %v1421_v63 = vperm.slane %v1413_v60, %v2809_v38  ;;  %v1595_v58 = vperm.slane %v1587_v53, %v2809_v38  ;;  %v1602_v0 = vrot.slane %v1583_v52, 4  ;;  %v1573_v1 = vsel %vm349_vm1, %v1572_v50, %v1554_v25 }
 0x88a   : > { %v1411_v2 = vsel %vm349_vm1, %v1410_v57, %v1385_v33  ;;  %v1422_v3 = vrot.slane %v1405_v56, 4  ;;  %v1425_v4 = vsel %vm349_vm1, 0.0, %v1424_v61  ;;  %v1430_v5 = vsel %vm349_vm1, %v1424_v61, %v1405_v56 }
 0x88b   : > { %v1417_v6 = vperm.slane %v1411_v2, %v2809_v38  ;;  %v1428_v7 = vrot.slane %v1421_v63, 4  ;;  %v1434_v59 = vperm.slane %v1430_v5, %v2799_v24  ;;  %v1435_v62 = vrot.slane %v1425_v4, 4 }
 0x88c   : > { %v1423_v9 = vsel %vm349_vm1, 0.0, %v1422_v3  ;;  %v1600_v10 = vrot.slane %v1595_v58, 4  ;;  %v1603_v11 = vsel %vm349_vm1, %v1595_v58, %v1602_v0  ;;  %v1579_v12 = vperm.slane %v1573_v1, %v2809_v38  ;;  %v2542_v0 = vld [vmem:[%s3507_s5 + $0xb] ss:$0 sm:$0xff] }
 0x88d   : > { %v1426_v13 = vrot.slane %v1417_v6, 4  ;;  %v1429_v14 = vsel %vm349_vm1, 0.0, %v1428_v7  ;;  %v1436_v15 = vsel %vm349_vm1, %v1435_v62, %v1423_v9  ;;  %v1441_v16 = vsel %vm349_vm1, %v1428_v7, %v1417_v6  ;;  %2452 = vmatpush.xpose.msk.msrb.mxu0 %vm699_vm2, %v1603_v11 }
 0x88e   : > { %v1445_v17 = vperm.slane %v1441_v16, %v2799_v24  ;;  %v1446_v18 = vrot.slane %v1429_v14, 4  ;;  %v1601_v19 = vsel %vm349_vm1, %v1600_v10, %v1583_v52  ;;  %v1585_v20 = vsel %vm349_vm1, %v1584_v54, %v1565_v32  ;;  %v1361_v52 = vpop.f32.mrf.mxu3 }
 0x88f   : > { %v1427_v21 = vsel %vm349_vm1, 0.0, %v1426_v13  ;;  %2450 = vmatpush.xpose.msk.msra.mxu3 %vm699_vm2, %v1601_v19  ;;  %v1591_v22 = vperm.slane %v1585_v20, %v2809_v38  ;;  %v1598_v25 = vrot.slane %v1579_v12, 4  ;;  %v1440_v26 = vperm.slane %v1436_v15, %v2799_v24 }
 0x890   : > { %v1447_v27 = vsel %vm349_vm1, %v1446_v18, %v1427_v21  ;;  %v1454_v28 = vrot.slane %v1434_v59, 4  ;;  %v1466_v8 = vrot.slane %v1445_v17, 4  ;;  %v1362_v1 = vadd.f32 %v2542_v0, %v1361_v52 }
 0x891   : > { %v1596_v29 = vrot.slane %v1591_v22, 4  ;;  %v1599_v30 = vsel %vm349_vm1, %v1591_v22, %v1598_v25  ;;  %v1451_v31 = vperm.slane %v1447_v27, %v2799_v24  ;;  %v1452_v33 = vrot.slane %v1440_v26, 4 }
 0x892   : > { %2448 = vmatpush.xpose.msk.msra.mxu2 %vm699_vm2, %v1599_v30  ;;  %v1455_v32 = vsel %vm349_vm1, %v1440_v26, %v1454_v28  ;;  %v1616_v21 = vrot.slane %v1362_v1, 4 }
 0x893   : > { %v1597_v34 = vsel %vm349_vm1, %v1596_v29, %v1579_v12  ;;  %v1463_v36 = vperm.slane %v1455_v32, %v2809_v38  ;;  %v1467_v37 = vsel %vm349_vm1, %v1451_v31, %v1466_v8  ;;  %v1453_v39 = vsel %vm349_vm1, %v1452_v33, %v1434_v59 }
 0x894   : > { %2446 = vmatpush.xpose.msk.msra.mxu1 %vm699_vm2, %v1597_v34  ;;  %v1475_v40 = vperm.slane %v1467_v37, %v2809_v38  ;;  %v1459_v41 = vperm.slane %v1453_v39, %v2809_v38  ;;  %v1464_v42 = vrot.slane %v1451_v31, 4 }
 0x895   : > { %v1482_v43 = vrot.slane %v1463_v36, 4 }
 0x896   : > { %v1480_v44 = vrot.slane %v1475_v40, 4  ;;  %v1465_v45 = vsel %vm349_vm1, %v1464_v42, %v1445_v17  ;;  %v1478_v46 = vrot.slane %v1459_v41, 4 }
 0x897   : > { %v1471_v47 = vperm.slane %v1465_v45, %v2809_v38  ;;  %v1483_v48 = vsel %vm349_vm1, %v1475_v40, %v1482_v43 }
 0x898   : > { %v1481_v55 = vsel %vm349_vm1, %v1480_v44, %v1463_v36  ;;  %2453 = vmatmul.msk.f32.vlgmr.msrb.gmra.mxu0 %vm699_vm2, %v1483_v48 }
 0x899   : > { %2451 = vmatmul.msk.f32.vlgmr.msra.gmra.mxu3 %vm699_vm2, %v1481_v55  ;;  %v1476_v49 = vrot.slane %v1471_v47, 4  ;;  %v1479_v50 = vsel %vm349_vm1, %v1471_v47, %v1478_v46 }
 0x89a   : > { %2449 = vmatmul.msk.f32.vlgmr.msra.gmra.mxu2 %vm699_vm2, %v1479_v50 }
 0x89b   : > { %v1477_v51 = vsel %vm349_vm1, %v1476_v49, %v1459_v41 }
 0x89c   : > { %2447 = vmatmul.msk.f32.vlgmr.msra.gmra.mxu1 %vm699_vm2, %v1477_v51 }
 0x915   : > { %v1825_v53 = vpop.f32.mrf.mxu0 }
 0x916   : > { %v1837_v54 = vsel %vm699_vm2, %v1825_v53, -inf }
 0x917   : > { %1838 = vmax.xlane.f32.xlu1 %v1837_v54 }
 0x919   : > { %v1747_v56 = vpop.f32.mrf.mxu1 }
 0x91a   : > { %v1828_v57 = vsel %vm699_vm2, %v1747_v56, -inf }
 0x91b   : > { %1829 = vmax.xlane.f32.xlu2 %v1828_v57 }
 0x91c   : > { %v1799_v60 = vpop.f32.mrf.mxu3 }
 0x91d   : > { %v1773_v61 = vpop.f32.mrf.mxu2  ;;  %v1834_v63 = vsel %vm699_vm2, %v1799_v60, -inf }
 0x91e   : > { %v1831_v58 = vsel %vm699_vm2, %v1773_v61, -inf }
 0x91f   : > { %1835 = vmax.xlane.f32.xlu1 %v1834_v63  ;;  %1832 = vmax.xlane.f32.xlu0 %v1831_v58 }
 0x933   : > { %1608 = vrot.lane.b32.xlu2 %v1362_v1, %s2661_s20  ;;  %1605 = vrot.lane.b32.xlu0 %v1362_v1, %s2662_s26  ;;  %s240_s26 = sand.u32 1, %s2650_s22  }
 0x934   : > { %s2399_s28 = sshll.u32 %s240_s26, 3  ;;  %s2321_s14 = scalar_lea.sflag [#allocation3], %s240_s26 }
 0x935   : > { %s242_s12 = scalar_lea.vmem [#allocation2], %s2399_s28  ;;  %s2616_s28 = scalar_lea.hbm %s3508_s6, 16 }
 0x936   : > { %s2333_s25 = sshll.u32 %s242_s12, 4  ;;  %s2334_s25 = int_to_ptr.vmem [resolvable:$true] %s2333_s25 }
 0x938   : > { %1611 = vrot.lane.b32.xlu1 %v1362_v1, %s2660_s19  ;;  %s3514_s19 = smov 8  }
 0x98a   : > { %v1839_v2 = vpop.xlane.xlu1 %1838 }
 0x98b   : > { %v1843_v9 = vsub.f32 %v1825_v53, %v1839_v2 }
 0x98d   : > { %v1850_v13 = vmul.f32 1.442695, %v1843_v9 }
 0x98e   : > { %v1830_v3 = vpop.xlane.xlu2 %1829 }
 0x98f   : > { %v1840_v4 = vsub.f32 %v1747_v56, %v1830_v3 }
 0x991   : > { %v1844_v5 = vmul.f32 1.442695, %v1840_v4 }
 0x992   : > { %v1836_v6 = vpop.xlane.xlu1 %1835  ;;  %v1833_v7 = vpop.xlane.xlu0 %1832 }
 0x993   : > { %2574 = vpow2.f32 %v1844_v5  ;;  %v1842_v59 = vsub.f32 %v1799_v60, %v1836_v6  ;;  %v1841_v62 = vsub.f32 %v1773_v61, %v1833_v7 }
 0x995   : > { %v1848_v10 = vmul.f32 1.442695, %v1842_v59  ;;  %v1846_v11 = vmul.f32 1.442695, %v1841_v62 }
 0x996   : > { %v1609_v19 = vpop.permute.xlu2 %1608 }
 0x997   : > { %2576 = vpow2.f32 %v1848_v10  ;;  %v1614_v22 = vrot.slane %v1609_v19, 4  ;;  %v1617_v25 = vsel %vm349_vm1, %v1609_v19, %v1616_v21 }
 0x998   : > { %2578 = vpow2.f32 %v1846_v11  ;;  %v1625_v8 = vperm.slane %v1617_v25, %v2799_v24 }
 0x999   : > { %v3268_v12 = vpop.eup %2574  ;;  %2580 = vpow2.f32 %v1850_v13  ;;  %v1615_v28 = vsel %vm349_vm1, %v1614_v22, %v1362_v1 }
 0x99a   : > { %v1852_v14 = vsel %vm699_vm2, %v3268_v12, 0.0  ;;  %v1621_v30 = vperm.slane %v1615_v28, %v2799_v24  ;;  %v1652_v34 = vrot.slane %v1625_v8, 4 }
 0x99b   : > { %1853 = vadd.xlane.f32.xlu1 %v1852_v14 }
 0x99c   : > { %v1640_v39 = vrot.slane %v1621_v30, 4 }
 0x99d   : > { %v3272_v15 = vpop.eup %2576 }
 0x99e   : > { %v3274_v16 = vpop.eup %2578  ;;  %v1858_v17 = vsel %vm699_vm2, %v3272_v15, 0.0 }
 0x99f   : > { %1859 = vadd.xlane.f32.xlu0 %v1858_v17  ;;  %v1855_v18 = vsel %vm699_vm2, %v3274_v16, 0.0  ;;  %v3280_v20 = vpop.eup %2580 }
 0x9a0   : > { %1856 = vadd.xlane.f32.xlu2 %v1855_v18  ;;  %v1861_v27 = vsel %vm699_vm2, %v3280_v20, 0.0 }
 0x9a5   : > { %v1606_v26 = vpop.permute.xlu0 %1605 }
 0x9a6   : > { %v1628_v29 = vrot.slane %v1606_v26, 4 }
 0x9a7   : > { %1862 = vadd.xlane.f32.xlu0 %v1861_v27 }
 0x9aa   : > { %v1612_v31 = vpop.permute.xlu1 %1611 }
 0x9ab   : > { %v1626_v33 = vrot.slane %v1612_v31, 4  ;;  %v1629_v32 = vsel %vm349_vm1, %v1612_v31, %v1628_v29 }
 0x9ac   : > { %v1637_v36 = vperm.slane %v1629_v32, %v2799_v24 }
 0x9ad   : > { %v1627_v37 = vsel %vm349_vm1, %v1626_v33, %v1606_v26 }
 0x9ae   : > { %v1633_v40 = vperm.slane %v1627_v37, %v2799_v24  ;;  %v1650_v41 = vrot.slane %v1637_v36, 4  ;;  %v1653_v42 = vsel %vm349_vm1, %v1637_v36, %v1652_v34 }
 0x9af   : > { %v1661_v43 = vperm.slane %v1653_v42, %v2809_v38 }
 0x9b0   : > { %v1638_v44 = vrot.slane %v1633_v40, 4  ;;  %v1641_v45 = vsel %vm349_vm1, %v1633_v40, %v1640_v39  ;;  %v1651_v46 = vsel %vm349_vm1, %v1650_v41, %v1625_v8 }
 0x9b1   : > { %v1649_v47 = vperm.slane %v1641_v45, %v2809_v38  ;;  %v1657_v48 = vperm.slane %v1651_v46, %v2809_v38  ;;  %v1668_v55 = vrot.slane %v1661_v43, 4 }
 0x9b2   : > { %v1639_v49 = vsel %vm349_vm1, %v1638_v44, %v1621_v30 }
 0x9b3   : > { %v1645_v50 = vperm.slane %v1639_v49, %v2809_v38  ;;  %v1664_v51 = vrot.slane %v1649_v47, 4  ;;  %v1666_v52 = vrot.slane %v1657_v48, 4  ;;  %v1669_v53 = vsel %vm349_vm1, 0.0, %v1668_v55 }
 0x9b4   : > { %v1681_v54 = vsel %vm349_vm1, %v1668_v55, %v1657_v48  ;;  %v1686_v56 = vrot.slane %v1669_v53, 4 }
 0x9b5   : > { %v1662_v57 = vrot.slane %v1645_v50, 4  ;;  %v1665_v60 = vsel %vm349_vm1, 0.0, %v1664_v51  ;;  %v1667_v61 = vsel %vm349_vm1, 0.0, %v1666_v52  ;;  %v1685_v63 = vperm.slane %v1681_v54, %v2799_v24 }
 0x9b6   : > { %v1675_v58 = vrot.slane %v1665_v60, 4  ;;  %v1687_v0 = vsel %vm349_vm1, %v1686_v56, %v1667_v61  ;;  %v1670_v1 = vsel %vm349_vm1, %v1664_v51, %v1645_v50 }
 0x9b7   : > { %v1663_v2 = vsel %vm349_vm1, 0.0, %v1662_v57  ;;  %v1674_v3 = vperm.slane %v1670_v1, %v2799_v24  ;;  %v1691_v4 = vperm.slane %v1687_v0, %v2799_v24  ;;  %v1706_v5 = vrot.slane %v1685_v63, 4 }
 0x9b8   : > { %v1676_v6 = vsel %vm349_vm1, %v1675_v58, %v1663_v2 }
 0x9b9   : > { %v1680_v7 = vperm.slane %v1676_v6, %v2799_v24  ;;  %v1694_v59 = vrot.slane %v1674_v3, 4  ;;  %v1707_v62 = vsel %vm349_vm1, %v1691_v4, %v1706_v5  ;;  %v1704_v9 = vrot.slane %v1691_v4, 4 }
 0x9ba   : > { %v1715_v10 = vperm.slane %v1707_v62, %v2809_v38 }
 0x9bb   : > { %v1695_v11 = vsel %vm349_vm1, %v1680_v7, %v1694_v59  ;;  %v1692_v13 = vrot.slane %v1680_v7, 4  ;;  %v1705_v14 = vsel %vm349_vm1, %v1704_v9, %v1685_v63 }
 0x9bc   : > { %v1703_v17 = vperm.slane %v1695_v11, %v2809_v38  ;;  %v1720_v18 = vrot.slane %v1715_v10, 4  ;;  %v1711_v19 = vperm.slane %v1705_v14, %v2809_v38 }
 0x9bd   : > { %v1693_v21 = vsel %vm349_vm1, %v1692_v13, %v1674_v3 }
 0x9be   : > { %v1721_v22 = vsel %vm349_vm1, %v1720_v18, %v1703_v17  ;;  %v1699_v25 = vperm.slane %v1693_v21, %v2809_v38  ;;  %v1716_v26 = vrot.slane %v1711_v19, 4  ;;  %v1722_v27 = vrot.slane %v1703_v17, 4 }
 0x9bf   : > { %1988 = vmatpush.msrb.mxu3 %v1721_v22 }
 0x9c0   : > { %v1717_v28 = vsel %vm349_vm1, %v1716_v26, %v1699_v25  ;;  %v1723_v8 = vsel %vm349_vm1, %v1715_v10, %v1722_v27  ;;  %v1718_v29 = vrot.slane %v1699_v25, 4 }
 0x9c1   : > { %1942 = vmatpush.msrb.mxu1 %v1717_v28  ;;  %2011 = vmatpush.msra.mxu0 %v1723_v8 }
 0x9c2   : > { %v1719_v30 = vsel %vm349_vm1, %v1711_v19, %v1718_v29 }
 0x9c3   : > { %1965 = vmatpush.msrb.mxu2 %v1719_v30 }
 0xa0e   : > { %v1854_v31 = vpop.xlane.xlu1 %1853 }
 0xa0f   : > { %2582 = vrcp.f32 %v1854_v31  ;;  %v1873_v39 = vand.u32 2147483647, %v1854_v31  ;;  %v1875_v41 = vand.u32 2147483648, %v1854_v31  ;;  %vm1869_vm4 = vweird.f32 %v1854_v31 }
 0xa11   : > { %vm1874_vm5 = vcmp.eq.f32.partialorder %v1873_v39, 8.507059e+37  ;;  %v1876_v55 = vor.u32 1.1754944e-38, %v1875_v41 }
 0xa12   : > { %v1860_v33 = vpop.xlane.xlu0 %1859 }
 0xa13   : > { %2584 = vrcp.f32 %v1860_v33  ;;  %v1857_v32 = vpop.xlane.xlu2 %1856  ;;  %v1903_v49 = vand.u32 2147483647, %v1860_v33  ;;  %v1905_v50 = vand.u32 2147483648, %v1860_v33  ;;  %vm1899_vm11 = vweird.f32 %v1860_v33 }
 0xa14   : > { %2586 = vrcp.f32 %v1857_v32  ;;  %v1890_v54 = vand.u32 2147483648, %v1857_v32  ;;  %v1888_v60 = vand.u32 2147483647, %v1857_v32  ;;  %vm1884_vm14 = vweird.f32 %v1857_v32 }
 0xa15   : > { %v2583_v34 = vpop.eup %2582  ;;  %v1906_v0 = vor.u32 1.1754944e-38, %v1905_v50  ;;  %vm1904_vm15 = vcmp.eq.f32.partialorder %v1903_v49, 8.507059e+37 }
 0xa16   : > { %v1865_v36 = vmul.f32 %v2583_v34, %v1854_v31  ;;  %vm1870_vm3 = vweird.f32 %v2583_v34  ;;  %v1891_v3 = vor.u32 1.1754944e-38, %v1890_v54 }
 0xa17   : > { %vm1871_vm8 = vmor %vm1869_vm4, %vm1870_vm3  ;;  %vm1889_vm4 = vcmp.eq.f32.partialorder %v1888_v60, 8.507059e+37 }
 0xa18   : > { %v1866_v37 = vsub.f32 1.0, %v1865_v36 }
 0xa19   : > { %v2585_v40 = vpop.eup %2584 }
 0xa1a   : > { %v2587_v42 = vpop.eup %2586  ;;  %v1867_v43 = vmul.f32 %v2583_v34, %v1866_v37  ;;  %v1895_v44 = vmul.f32 %v2585_v40, %v1860_v33  ;;  %v1863_v45 = vpop.xlane.xlu0 %1862  ;;  %vm1900_vm9 = vweird.f32 %v2585_v40 }
 0xa1b   : > { %v1880_v46 = vmul.f32 %v2587_v42, %v1857_v32  ;;  %2588 = vrcp.f32 %v1863_v45  ;;  %vm1885_vm10 = vweird.f32 %v2587_v42  ;;  %vm1901_vm13 = vmor %vm1899_vm11, %vm1900_vm9  ;;  %v1918_v11 = vand.u32 2147483647, %v1863_v45 }
 0xa1c   : > { %v1868_v47 = vadd.f32 %v2583_v34, %v1867_v43  ;;  %v1896_v48 = vsub.f32 1.0, %v1895_v44  ;;  %vm1886_vm3 = vmor %vm1884_vm14, %vm1885_vm10 }
 0xa1d   : > { %v1881_v51 = vsub.f32 1.0, %v1880_v46  ;;  %vm1919_vm10 = vcmp.eq.f32.partialorder %v1918_v11, 8.507059e+37 }
 0xa1e   : > { %v1872_v52 = vsel %vm1871_vm8, %v2583_v34, %v1868_v47  ;;  %v1897_v53 = vmul.f32 %v2585_v40, %v1896_v48  ;;  %vm1914_vm8 = vweird.f32 %v1863_v45 }
 0xa1f   : > { %v1877_v56 = vsel %vm1874_vm5, %v1876_v55, %v1872_v52  ;;  %v1882_v57 = vmul.f32 %v2587_v42, %v1881_v51 }
 0xa20   : > { %v1898_v61 = vadd.f32 %v2585_v40, %v1897_v53  ;;  %v1878_v63 = vmul.f32 %v3268_v12, %v1877_v56  ;;  %v1920_v12 = vand.u32 2147483648, %v1863_v45 }
 0xa21   : > { %v2589_v58 = vpop.eup %2588  ;;  %v1883_v1 = vadd.f32 %v2587_v42, %v1882_v57 }
 0xa22   : > { %v1902_v2 = vsel %vm1901_vm13, %v2585_v40, %v1898_v61  ;;  %v1910_v4 = vmul.f32 %v2589_v58, %v1863_v45  ;;  %2454 = vmatmul.msk.f32.vlgmr.msrb.gmra.mxu1 %vm699_vm2, %v1878_v63  ;;  %vm1915_vm5 = vweird.f32 %v2589_v58  ;;  %v1921_v14 = vor.u32 1.1754944e-38, %v1920_v12 }
 0xa23   : > { %v1907_v5 = vsel %vm1904_vm15, %v1906_v0, %v1902_v2  ;;  %v1887_v6 = vsel %vm1886_vm3, %v2587_v42, %v1883_v1  ;;  %vm1916_vm9 = vmor %vm1914_vm8, %vm1915_vm5 }
 0xa24   : > { %v1892_v7 = vsel %vm1889_vm4, %v1891_v3, %v1887_v6  ;;  %v1911_v59 = vsub.f32 1.0, %v1910_v4  ;;  %v1908_v62 = vmul.f32 %v3272_v15, %v1907_v5 }
 0xa25   : > { %v1893_v9 = vmul.f32 %v3274_v16, %v1892_v7 }
 0xa26   : > { %v1912_v10 = vmul.f32 %v2589_v58, %v1911_v59  ;;  %2456 = vmatmul.msk.f32.vlgmr.msrb.gmra.mxu3 %vm699_vm2, %v1908_v62 }
 0xa27   : > { %2455 = vmatmul.msk.f32.vlgmr.msrb.gmra.mxu2 %vm699_vm2, %v1893_v9 }
 0xa28   : > { %v1913_v13 = vadd.f32 %v2589_v58, %v1912_v10 }
 0xa2a   : > { %v1917_v17 = vsel %vm1916_vm9, %v2589_v58, %v1913_v13 }
 0xa2b   : > { %v1922_v18 = vsel %vm1919_vm10, %v1921_v14, %v1917_v17 }
 0xa2c   : > { %v1923_v19 = vmul.f32 %v3280_v20, %v1922_v18 }
 0xa2e   : > { %2457 = vmatmul.msk.f32.vlgmr.msra.gmra.mxu0 %vm699_vm2, %v1923_v19 }
 0xa9f   : > { %v1944_v15 = vpop.f32.mrf.mxu1 }
 0xaa0   : > { %v2018_v16 = vrot.slane %v1944_v15, 4 }
 0xaa9   : > { %v1990_v21 = vpop.f32.mrf.mxu3 }
 0xaaa   : > { %v1967_v22 = vpop.f32.mrf.mxu2  ;;  %v2016_v25 = vrot.slane %v1990_v21, 4  ;;  %v2019_v26 = vsel %vm349_vm1, %v1990_v21, %v2018_v16 }
 0xaab   : > { %v2030_v27 = vrot.slane %v1967_v22, 4  ;;  %v2027_v28 = vperm.slane %v2019_v26, %v2799_v24  ;;  %v2013_v8 = vpop.f32.mrf.mxu0  ;;  %v2460_v26 = vld [vmem:[%s3503_s1 + $0xf0] sm:$0xff] }
 0xaac   : > { %v2017_v29 = vsel %vm349_vm1, %v2016_v25, %v1944_v15  ;;  %v2028_v30 = vrot.slane %v2013_v8, 4 }
 0xaad   : > { %v2023_v31 = vperm.slane %v2017_v29, %v2799_v24  ;;  %v2054_v33 = vrot.slane %v2027_v28, 4  ;;  %v2031_v20 = vsel %vm349_vm1, %v2013_v8, %v2030_v27  ;;  %v2459_v27 = vld [vmem:[%s3503_s1 + $0xe8] sm:$0xff] }
 0xaae   : > { %v2029_v32 = vsel %vm349_vm1, %v2028_v30, %v1967_v22  ;;  %v2039_v34 = vperm.slane %v2031_v20, %v2799_v24 }
 0xaaf   : > { %v2042_v36 = vrot.slane %v2023_v31, 4  ;;  %v2035_v37 = vperm.slane %v2029_v32, %v2799_v24  ;;  %v2543_v32 = vld [vmem:[%s3507_s5 + $0xc] ss:$0 sm:$0xff] }
 0xab0   : > { %v2052_v39 = vrot.slane %v2039_v34, 4  ;;  %v2055_v40 = vsel %vm349_vm1, %v2039_v34, %v2054_v33 }
 0xab1   : > { %v2040_v41 = vrot.slane %v2035_v37, 4  ;;  %v2043_v42 = vsel %vm349_vm1, %v2035_v37, %v2042_v36  ;;  %v2063_v43 = vperm.slane %v2055_v40, %v2809_v38 }
 0xab2   : > { %v2051_v44 = vperm.slane %v2043_v42, %v2809_v38  ;;  %v2053_v45 = vsel %vm349_vm1, %v2052_v39, %v2027_v28  ;;  %v2458_v28 = vld [vmem:[%s3503_s1 + $0xe0] sm:$0xff] }
 0xab3   : > { %v2041_v46 = vsel %vm349_vm1, %v2040_v41, %v2023_v31  ;;  %v2059_v47 = vperm.slane %v2053_v45, %v2809_v38  ;;  %v2070_v48 = vrot.slane %v2063_v43, 4  ;;  %v2466_v45 = vld [vmem:[%s3504_s2 + $0x38] sm:$0xff] }
 0xab4   : > { %v2047_v55 = vperm.slane %v2041_v46, %v2809_v38  ;;  %v2066_v49 = vrot.slane %v2051_v44, 4  ;;  %v2465_v46 = vld [vmem:[%s3504_s2 + $0x30] sm:$0xff]  ;;  %2222 = vmatpush.msra.mxu2 %v2466_v45 }
 0xab5   : > { %v2068_v50 = vrot.slane %v2059_v47, 4  ;;  %v2071_v51 = vsel %vm349_vm1, 0.0, %v2070_v48  ;;  %v2083_v52 = vsel %vm349_vm1, %v2070_v48, %v2059_v47  ;;  %v2463_v47 = vld [vmem:[%s3504_s2 + $0x20] sm:$0xff]  ;;  %v2476_v48 = vld [vmem:[%s3505_s3 + $0x78] sm:$0xff] }
 0xab6   : > { %v2064_v53 = vrot.slane %v2047_v55, 4  ;;  %v2067_v54 = vsel %vm349_vm1, 0.0, %v2066_v49  ;;  %v2087_v56 = vperm.slane %v2083_v52, %v2799_v24  ;;  %v2088_v57 = vrot.slane %v2071_v51, 4  ;;  %2223 = vmatpush.msra.mxu2 %v2465_v46  ;;  %2252 = vmatpush.msra.mxu3 %v2476_v48  ;;  %v2473_v52 = vld [vmem:[%s3505_s3 + $0x60] sm:$0xff] }
 0xab7   : > { %v2069_v60 = vsel %vm349_vm1, 0.0, %v2068_v50  ;;  %v2077_v61 = vrot.slane %v2067_v54, 4  ;;  %v2072_v63 = vsel %vm349_vm1, %v2066_v49, %v2047_v55  ;;  %v2475_v55 = vld [vmem:[%s3505_s3 + $0x70] sm:$0xff]  ;;  %v2474_v49 = vld [vmem:[%s3505_s3 + $0x68] sm:$0xff]  ;;  %v2472_v54 = vld [vmem:[%s3505_s3 + $0x58] sm:$0xff] }
 0xab8   : > { %v2065_v58 = vsel %vm349_vm1, 0.0, %v2064_v53  ;;  %v2076_v0 = vperm.slane %v2072_v63, %v2799_v24  ;;  %v2089_v1 = vsel %vm349_vm1, %v2088_v57, %v2069_v60  ;;  %v2108_v2 = vrot.slane %v2087_v56, 4  ;;  %2253 = vmatpush.msra.mxu3 %v2475_v55 }
 0xab9   : > { %v2078_v3 = vsel %vm349_vm1, %v2077_v61, %v2065_v58  ;;  %v2093_v4 = vperm.slane %v2089_v1, %v2799_v24 }
 0xaba   : > { %v2082_v5 = vperm.slane %v2078_v3, %v2799_v24  ;;  %v2096_v6 = vrot.slane %v2076_v0, 4  ;;  %2254 = vmatpush.msra.mxu3 %v2474_v49  ;;  %v2545_v3 = vld [vmem:[%s3507_s5 + $0xf] ss:$0 sm:$0xff] }
 0xabb   : > { %v2109_v7 = vsel %vm349_vm1, %v2093_v4, %v2108_v2  ;;  %v2106_v59 = vrot.slane %v2093_v4, 4 }
 0xabc   : > { %v2097_v62 = vsel %vm349_vm1, %v2082_v5, %v2096_v6  ;;  %v2117_v12 = vperm.slane %v2109_v7, %v2809_v38  ;;  %v2094_v9 = vrot.slane %v2082_v5, 4  ;;  %2255 = vmatpush.msra.mxu3 %v2473_v52  ;;  %v2471_v6 = vld [vmem:[%s3505_s3 + $0x50] sm:$0xff]  ;;  %v2470_v7 = vld [vmem:[%s3505_s3 + $0x48] sm:$0xff] }
 0xabd   : > { %v2105_v10 = vperm.slane %v2097_v62, %v2809_v38  ;;  %v2107_v11 = vsel %vm349_vm1, %v2106_v59, %v2087_v56  ;;  %v2469_v59 = vld [vmem:[%s3505_s3 + $0x40] sm:$0xff] }
 0xabe   : > { %v2122_v13 = vrot.slane %v2117_v12, 4  ;;  %v2095_v14 = vsel %vm349_vm1, %v2094_v9, %v2076_v0  ;;  %v2113_v17 = vperm.slane %v2107_v11, %v2809_v38  ;;  %2256 = vmatpush.msra.mxu3 %v2472_v54  ;;  %v2544_v0 = vld [vmem:[%s3507_s5 + $0xe] ss:$0 sm:$0xff]  ;;  %v2546_v62 = vld [vmem:[%s3506_s4 + $0x1] ss:$0 sm:$0xff] }
 0xabf   : > { %v2124_v18 = vrot.slane %v2105_v10, 4  ;;  %v2101_v24 = vperm.slane %v2095_v14, %v2809_v38  ;;  %v2461_v38 = vld [vmem:[%s3503_s1 + $0xf8] sm:$0xff]  ;;  %v2547_v11 = vld [vmem:[%s3507_s5 + $0xd] ss:$0 sm:$0xff] }
 0xac0   : > { %v2123_v19 = vsel %vm349_vm1, %v2122_v13, %v2105_v10  ;;  %v2118_v15 = vrot.slane %v2113_v17, 4  ;;  %2162 = vmatpush.msra.mxu1 %v2461_v38  ;;  %2257 = vmatpush.msra.mxu3 %v2471_v6 }
 0xac1   : > { %2131 = vrot.lane.b32.xlu0 %v2123_v19, %s2666_s18  ;;  %v2125_v16 = vsel %vm349_vm1, %v2117_v12, %v2124_v18  ;;  %v2120_v21 = vrot.slane %v2101_v24, 4 }
 0xac2   : > { %2135 = vrot.lane.b32.xlu1 %v2125_v16, %s2665_s17  ;;  %v2119_v22 = vsel %vm349_vm1, %v2118_v15, %v2101_v24  ;;  %2163 = vmatpush.msra.mxu1 %v2460_v26 }
 0xac3   : > { %v2121_v25 = vsel %vm349_vm1, %v2113_v17, %v2120_v21  ;;  %2258 = vmatpush.msra.mxu3 %v2470_v7 }
 0xac4   : > { %2127 = vrot.lane.b32.xlu2 %v2121_v25, %s3514_s19  ;;  %2164 = vmatpush.msra.mxu1 %v2459_v27  ;;  %s2610_s19 = sshra.s32 %s2336_s13, 4  ;;  %s2611_s19 = int_to_ptr.hbm [resolvable:$true] %s2610_s19 }
 0xac5   : > { %2259 = vmatpush.msra.mxu3 %v2469_v59  ;;  %s2612_s20 = scalar_lea.hbm %s2611_s19, 8  ;;  %p2617_p0 = scmp.lt.s32.totalorder %s2611_s19, %s3508_s6 }
 0xac6   : > { %2165 = vmatpush.msra.mxu1 %v2458_v28  ;;  %p2613_p11 = scmp.ne.s32.totalorder %s2611_s19, %s2612_s20  ;;  %p2618_p1 = scmp.lt.s32.totalorder %s2616_s28, %s2612_s20 }
 0xac8   : > { %p2614_p12 = pnand %p2613_p11, %p2742_p5  ;;  %p2619_p2 = por %p2618_p1, %p2617_p0 }
 0xaca   : > { %p2615_p13 = pneg %p2614_p12 }
 0xacc   : > { %p2620_p3 = pnand %p2619_p2, %p2615_p13 }
 0xb1e   : > { %v2128_v8 = vpop.permute.xlu2 %2127 }
 0xb1f   : > { %v2138_v29 = vsel %vm699_vm2, %v2119_v22, %v2128_v8 }
 0xb33   : > { %v2132_v30 = vpop.permute.xlu0 %2131 }
 0xb34   : > { %v2139_v31 = vsel %vm1115_vm6, %v2138_v29, %v2132_v30  ;;  %v2136_v33 = vpop.permute.xlu1 %2135 }
 0xb35   : > { %v2140_v20 = vsel %vm1117_vm7, %v2139_v31, %v2136_v33  ;;  %v2548_v31 = vld [vmem:[%s3507_s5 + $0x10] ss:$0 sm:$0xff] }
 0xb36   : > { %2462 = vmatmul.msk.f32.vlgmr.msra.gmra.mxu1 %vm262_vm0, %v2140_v20 }
 0xbb3   : > { %v2167_v34 = vpop.f32.mrf.mxu1 }
 0xbb4   : > { %v2168_v36 = vadd.f32 %v2543_v32, %v2167_v34  ;;  %v2549_v32 = vld [vmem:[%s3507_s5 + $0x11] ss:$0 sm:$0xff] }
 0xbb6   : > { %v2170_v37 = vadd.f32 %v2168_v36, %v3150_v35  ;;  %v2464_v35 = vld [vmem:[%s3504_s2 + $0x28] sm:$0xff] }
 0xbb7   : > { %2224 = vmatpush.msra.mxu2 %v2464_v35 }
 0xbb8   : > { %v2171_v39 = vsel %vm262_vm0, %v2170_v37, 0.0 }
 0xbb9   : > { %2172 = vadd.xlane.f32.xlu2 %v2171_v39  ;;  %2225 = vmatpush.msra.mxu2 %v2463_v47 }
 0xc2c   : > { %v2173_v40 = vpop.xlane.xlu2 %2172 }
 0xc2d   : > { %v2174_v41 = vmul.f32 %v2173_v40, %v3049_v23 }
 0xc2f   : > { %v2175_v42 = vsub.f32 %v2170_v37, %v2174_v41 }
 0xc31   : > { %v2176_v43 = vmul.f32 %v2175_v42, %v2175_v42 }
 0xc33   : > { %v2177_v44 = vsel %vm262_vm0, %v2176_v43, 0.0 }
 0xc34   : > { %2178 = vadd.xlane.f32.xlu0 %v2177_v44 }
 0xca7   : > { %v2179_v50 = vpop.xlane.xlu0 %2178 }
 0xca8   : > { %v2180_v51 = vmul.f32 %v2179_v50, %v3049_v23 }
 0xcaa   : > { %v2181_v53 = vadd.f32 1e-05, %v2180_v51  ;;  %v2550_v51 = vld [vmem:[%s3507_s5 + $0x12] ss:$0 sm:$0xff] }
 0xcac   : > { %2590 = vrsqrt.f32 %v2181_v53  ;;  %vm2188_vm2 = vweird.f32 %v2181_v53 }
 0xcb2   : > { %v2591_v56 = vpop.eup %2590 }
 0xcb3   : > { %v2183_v57 = vmul.f32 %v2591_v56, %v2181_v53  ;;  %vm2189_vm1 = vweird.f32 %v2591_v56  ;;  %v2551_v53 = vld [vmem:[%s3507_s5 + $0x13] ss:$0 sm:$0xff] }
 0xcb4   : > { %vm2190_vm6 = vmor %vm2188_vm2, %vm2189_vm1 }
 0xcb5   : > { %v2184_v60 = vmul.f32 %v2591_v56, %v2183_v57 }
 0xcb7   : > { %v2185_v61 = vmul.f32 0.5, %v2184_v60 }
 0xcb9   : > { %v2186_v63 = vsub.f32 1.5, %v2185_v61 }
 0xcbb   : > { %v2187_v58 = vmul.f32 %v2591_v56, %v2186_v63 }
 0xcbd   : > { %v2191_v1 = vsel %vm2190_vm6, %v2591_v56, %v2187_v58 }
 0xcbe   : > { %v2192_v2 = vmul.f32 %v2191_v1, %v2175_v42 }
 0xcc0   : > { %v2194_v4 = vmul.f32 %v2544_v0, %v2192_v2 }
 0xcc2   : > { %v2196_v5 = vadd.f32 %v2545_v3, %v2194_v4 }
 0xcc4   : > { %2468 = vmatmul.msk.f32.vlgmr.msra.gmra.mxu2 %vm262_vm0, %v2196_v5 }
 0xd47   : > { %v2227_v12 = vpop.f32.mrf.mxu2 }
 0xd48   : > { %v2228_v9 = vadd.f32 %v2546_v62, %v2227_v12 }
 0xd4a   : > { %v2230_v10 = vmax.f32 %v2228_v9, 0.0 }
 0xd4c   : > { %2477 = vmatmul.msk.f32.vlgmr.msra.gmra.mxu3 %vm1223_vm12, %v2230_v10 }
 0xdcf   : > { %v2261_v13 = vpop.f32.mrf.mxu3 }
 0xdd0   : > { %v2262_v14 = vadd.f32 %v2547_v11, %v2261_v13 }
 0xdd2   : > { %v2264_v17 = vadd.f32 %v2262_v14, %v2196_v5 }
 0xdd4   : > { %v2265_v18 = vsel %vm262_vm0, %v2264_v17, 0.0 }
 0xdd5   : > { %2266 = vadd.xlane.f32.xlu1 %v2265_v18 }
 0xe48   : > { %v2267_v24 = vpop.xlane.xlu1 %2266 }
 0xe49   : > { %v2268_v19 = vmul.f32 %v2267_v24, %v3049_v23 }
 0xe4b   : > { %v2269_v15 = vsub.f32 %v2264_v17, %v2268_v19 }
 0xe4d   : > { %v2270_v16 = vmul.f32 %v2269_v15, %v2269_v15 }
 0xe4f   : > { %v2271_v21 = vsel %vm262_vm0, %v2270_v16, 0.0 }
 0xe50   : > { %2272 = vadd.xlane.f32.xlu2 %v2271_v21 }
 0xec3   : > { %v2273_v22 = vpop.xlane.xlu2 %2272 }
 0xec4   : > { %v2274_v25 = vmul.f32 %v2273_v22, %v3049_v23 }
 0xec6   : > { %v2275_v38 = vadd.f32 1e-05, %v2274_v25 }
 0xec8   : > { %2592 = vrsqrt.f32 %v2275_v38  ;;  %vm2282_vm12 = vweird.f32 %v2275_v38 }
 0xece   : > { %v2593_v26 = vpop.eup %2592 }
 0xecf   : > { %v2277_v27 = vmul.f32 %v2593_v26, %v2275_v38  ;;  %vm2283_vm7 = vweird.f32 %v2593_v26 }
 0xed0   : > { %vm2284_vm11 = vmor %vm2282_vm12, %vm2283_vm7 }
 0xed1   : > { %v2278_v28 = vmul.f32 %v2593_v26, %v2277_v27 }
 0xed3   : > { %v2279_v8 = vmul.f32 0.5, %v2278_v28 }
 0xed5   : > { %v2280_v29 = vsub.f32 1.5, %v2279_v8 }
 0xed7   : > { %v2281_v30 = vmul.f32 %v2593_v26, %v2280_v29 }
 0xed9   : > { %v2285_v33 = vsel %vm2284_vm11, %v2593_v26, %v2281_v30 }
 0xeda   : > { %v2286_v20 = vmul.f32 %v2285_v33, %v2269_v15 }
 0xedc   : > { %v2288_v34 = vmul.f32 %v2548_v31, %v2286_v20 }
 0xede   : > { %v2290_v36 = vadd.f32 %v2549_v32, %v2288_v34 }
 0xee0   : > { %v2293_v37 = vsel %vm262_vm0, %v2290_v36, 0.0 }
 0xee1   : > { %2294 = vadd.xlane.f32.xlu0 %v2293_v37 }
 0xf54   : > { %v2295_v39 = vpop.xlane.xlu0 %2294 }
 0xf55   : > { %v2296_v40 = vmul.f32 %v2295_v39, %v3049_v23 }
 0xf57   : > { %v2297_v41 = vsub.f32 %v2290_v36, %v2296_v40 }
 0xf59   : > { %v2298_v42 = vmul.f32 %v2297_v41, %v2297_v41 }
 0xf5b   : > { %v2299_v43 = vsel %vm262_vm0, %v2298_v42, 0.0 }
 0xf5c   : > { %2300 = vadd.xlane.f32.xlu2 %v2299_v43 }
 0xfcf   : > { %v2301_v44 = vpop.xlane.xlu2 %2300 }
 0xfd0   : > { %v2302_v45 = vmul.f32 %v2301_v44, %v3049_v23 }
 0xfd2   : > { %v2303_v46 = vadd.f32 1e-05, %v2302_v45 }
 0xfd4   : > { %2594 = vrsqrt.f32 %v2303_v46  ;;  %vm2310_vm14 = vweird.f32 %v2303_v46 }
 0xfda   : > { %v2595_v35 = vpop.eup %2594 }
 0xfdb   : > { %v2305_v47 = vmul.f32 %v2595_v35, %v2303_v46  ;;  %vm2311_vm13 = vweird.f32 %v2595_v35 }
 0xfdc   : > { %vm2312_vm15 = vmor %vm2310_vm14, %vm2311_vm13 }
 0xfdd   : > { %v2306_v48 = vmul.f32 %v2595_v35, %v2305_v47 }
 0xfdf   : > { %v2307_v55 = vmul.f32 0.5, %v2306_v48 }
 0xfe1   : > { %v2308_v49 = vsub.f32 1.5, %v2307_v55 }
 0xfe3   : > { %v2309_v50 = vmul.f32 %v2595_v35, %v2308_v49 }
 0xfe5   : > { %v2313_v23 = vsel %vm2312_vm15, %v2595_v35, %v2309_v50 }
 0xfe6   : > { %v2314_v52 = vmul.f32 %v2313_v23, %v2297_v41 }
 0xfe8   : > { %v2316_v54 = vmul.f32 %v2550_v51, %v2314_v52 }
 0xfea   : > { %v2318_v56 = vadd.f32 %v2551_v53, %v2316_v54 }
 0xfec   : > { %2319 = vst.msk [vmem:[%s242_s12] sm:$0xff] %vm262_vm0, %v2318_v56 }
 0xfed   : > { %2623 = shalt.err (!%p2620_p3)
}
 0xfee   : > { %2482 = dma.vmem_to_hbm [thread:$0]  (%p2742_p5), %s2334_s25, 128, %s2336_s13, %s2321_s14  }
 0xfef PF: > { %p2488_p4 = scmp.ge.s32.totalorder %s2658_s24, 2  ;;  %s2347_s26 = sand.u32 1, %s2646_s21  }
 0xff0   : > { %s2348_s29 = scalar_lea.sflag [#allocation3], %s2347_s26 }
 0xff1   : > { %p2485_p7 = pnand %p2488_p4, %p2746_p6 }
 0xff3   : > { %p2486_p8 = pneg %p2485_p7 }
 0xff5   : > { %2641 = dma.done.wait (%p2486_p8), %s2348_s29, 128  }
 0xff6   : > { %2643 = vsyncadd (%p2486_p8), %s2348_s29, 4294967168  ;;  %p16_p9 = scmp.ge.s32.totalorder %s2729_s27, 4   ;;  %s3515_s21 = smov %s2650_s22 }
 0xff7   : > { %s3516_s22 = smov %s2654_s23  ;;  %s3517_s23 = smov %s2740_s30 }
 0xff8   : > { %s3518_s24 = smov %s2729_s27  ;;  %18 = sbr.rel (!%p16_p9) target bundleno = 3 (0x3), region = 89 }
 0xffd   :  { %2354 = vsyncpa [#allocation3], 1 }
 0xffe   :  { %2356 = vsyncpa [#allocation3 + $0x1], 1 }

</bundles_post_ra>
